<compile_context>
chip_gen: v7x
topology: tpu7x:2x2x1
jax: 0.10.0
libtpu: 0.0.40
codegen_flags: <defaults>
</compile_context>

<pallas_src>
import jax
import jax.numpy as jnp
from jax import lax
from jax.experimental import pallas as pl
from jax.experimental.pallas import tpu as pltpu

C = 512                      # channel count hard-coded by the PyTorch module
S_SINGLE_MAX = 4096          # largest S handled in a single K step (Path A)
TK_TARGET = 2048             # target contraction tile for Path B
BT_MAX = 8                   # cap on batches fused per Path A grid step
MXU_DTYPE = jnp.bfloat16     # MXU operand dtype (accumulation is always f32)
# TODO(synk): for bit-faithful fp32 bmm set MXU_DTYPE = None and pass
# precision=lax.Precision.HIGHEST to the dot_generals (slower multi-pass MXU).


def _round_up(a, m):
    return -(-a // m) * m


def _vmem_limit_bytes():
    """Generation-aware scoped-VMEM limit with headroom for compiler/DMA."""
    try:
        cap = getattr(pltpu.get_tpu_info(), "vmem_capacity_bytes", None)
    except Exception:  # best-effort query; fall back to a universally safe limit
        cap = None
    if not cap:
        return 32 * 1024 * 1024
    # ~48 MiB on v7x (64 MiB phys), ~96 MiB on v5e/v6e (128 MiB phys).
    return int(min((cap * 3) // 4, 100 * 1024 * 1024))


def _to_mxu(x):
    return x.astype(MXU_DTYPE) if MXU_DTYPE is not None else x


def _gram_kernel_batched(x_ref, o_ref):
    # x_ref: (bt, C, S)   o_ref: (bt, C, C)
    x = _to_mxu(x_ref[...])
    # Batched NT contraction: bcs, bds -> bcd (no materialized transpose).
    o_ref[...] = lax.dot_general(
        x, x,
        dimension_numbers=(((2,), (2,)), ((0,), (0,))),
        preferred_element_type=jnp.float32,
    ).astype(o_ref.dtype)


def _gram_kernel_tiled(x_ref, o_ref):
    # x_ref: (C, TK)   o_ref: (C, C) f32, VMEM-resident across the k axis.
    @pl.when(pl.program_id(2) == 0)
    def _():
        o_ref[...] = jnp.zeros_like(o_ref)

    x = _to_mxu(x_ref[...])
    o_ref[...] += lax.dot_general(
        x, x,
        dimension_numbers=(((1,), (1,)), ((), ())),
        preferred_element_type=jnp.float32,
    )


def bilinear_pool(x):
    """x: (B, 512, H, W) -> (B', 512*512), matching BP.forward exactly."""
    H = x.shape[2]
    S = H * H                          # torch: x.shape[2] ** 2
    x_flat = x.reshape(-1, C, S)       # torch: x.view(-1, 512, H**2)
    B = x_flat.shape[0]
    dtype = x_flat.dtype
    in_sz = x_flat.dtype.itemsize
    mxu_sz = jnp.dtype(MXU_DTYPE).itemsize if MXU_DTYPE is not None else in_sz

    vmem_limit = _vmem_limit_bytes()
    budget = vmem_limit - 4 * 1024 * 1024        # headroom for misc scratch

    cost = pl.CostEstimate(
        flops=2 * B * C * C * S,
        transcendentals=0,
        bytes_accessed=B * (C * S * in_sz + C * C * dtype.itemsize),
    )

    if S <= S_SINGLE_MAX:
        # ---- Path A: one K step; fuse bt Gram products per grid step.
        per_bt = (2 * C * S * in_sz              # double-buffered input block
                  + 2 * C * C * dtype.itemsize   # double-buffered output block
                  + C * S * mxu_sz               # in-kernel bf16 operand copy
                  + C * C * 4)                   # f32 dot result before astype
        bt_cap = int(max(1, min(BT_MAX, budget // per_bt)))
        bt = 1
        for cand in range(min(bt_cap, B), 0, -1):
            if B % cand == 0:
                bt = cand
                break
        out = pl.pallas_call(
            _gram_kernel_batched,
            out_shape=jax.ShapeDtypeStruct((B, C, C), dtype),
            grid_spec=pltpu.PrefetchScalarGridSpec(
                num_scalar_prefetch=0,
                grid=(B // bt,),
                in_specs=[pl.BlockSpec((bt, C, S), lambda i: (i, 0, 0))],
                out_specs=pl.BlockSpec((bt, C, C), lambda i: (i, 0, 0)),
            ),
            compiler_params=pltpu.CompilerParams(
                dimension_semantics=("parallel",),
                vmem_limit_bytes=vmem_limit),
            cost_estimate=cost,
        )(x_flat)
        return out.reshape(B, C * C)

    # ---- Path B: tile the contraction dim; accumulate into the resident f32
    # output block.  For B == 1 split K over a second "parallel" axis so both
    # v7x TensorCores are used (harmless size-1 axis elsewhere).
    num_k = -(-S // TK_TARGET)
    kc = 2 if (B == 1 and num_k >= 2) else 1
    num_k = kc * (-(-num_k // kc))
    tk = _round_up(-(-S // num_k), 128)          # keeps zero-pad waste small
    sp = num_k * tk
    if sp != S:
        # Zero-pad the contraction dim (zeros do not change X @ X^T).
        x_flat = jnp.pad(x_flat, ((0, 0), (0, 0), (0, sp - S)))
    nk_per = num_k // kc

    partial = pl.pallas_call(
        _gram_kernel_tiled,
        out_shape=jax.ShapeDtypeStruct((B, kc, C, C), jnp.float32),
        grid_spec=pltpu.PrefetchScalarGridSpec(
            num_scalar_prefetch=0,
            grid=(B, kc, nk_per),
            in_specs=[pl.BlockSpec(
                (None, C, tk), lambda b, c, k: (b, 0, c * nk_per + k))],
            out_specs=pl.BlockSpec(
                (None, None, C, C), lambda b, c, k: (b, c, 0, 0)),
        ),
        compiler_params=pltpu.CompilerParams(
            dimension_semantics=("parallel", "parallel", "arbitrary"),
            vmem_limit_bytes=vmem_limit),
        cost_estimate=cost,
    )(x_flat)
    out = partial.sum(axis=1).astype(dtype)      # tiny epilogue (kc <= 2)
    return out.reshape(B, C * C)


if __name__ == "__main__":
    key = jax.random.PRNGKey(0)
    k0, k1, k2 = jax.random.split(key, 3)

    def _ref(x):
        """Reference with the same operand rounding as the kernel (bf16->f32)."""
        xf = x.reshape(-1, C, x.shape[2] * x.shape[3])
        xb = _to_mxu(xf).astype(jnp.float32)
        g = jnp.einsum("bcs,bds->bcd", xb, xb, precision=lax.Precision.HIGHEST)
        return g.reshape(-1, C * C)

    def _check(y, ref, tol):
        rel = jnp.max(jnp.abs(y.astype(jnp.float32) - ref)) / jnp.max(jnp.abs(ref))
        assert rel < tol, float(rel)

    # Path A, bt > 1: B=2, 8x8 feature map (S=64).
    x = jax.random.normal(k0, (2, C, 8, 8), dtype=jnp.float32)
    y = jax.block_until_ready(bilinear_pool(x))
    assert y.shape == (2, C * C) and y.dtype == x.dtype
    _check(y, _ref(x), 1e-3)
    # Sanity vs full-f32 reference (bf16 MXU operands => loose tolerance).
    xf = x.reshape(2, C, 64)
    ref32 = jnp.einsum("bcs,bds->bcd", xf, xf,
                       precision=lax.Precision.HIGHEST).reshape(2, C * C)
    _check(y, ref32, 2e-2)

    # Path A, odd batch (divisor-based bt selection): B=3, 12x12 map (S=144).
    x2 = jax.random.normal(k1, (3, C, 12, 12), dtype=jnp.float32)
    y2 = jax.block_until_ready(bilinear_pool(x2))
    assert y2.shape == (3, C * C)
    _check(y2, _ref(x2), 1e-3)

    # Path B, K-tiled + K-split parallel axis: B=1, 65x65 map (S=4225 > 4096).
    x3 = jax.random.normal(k2, (1, C, 65, 65), dtype=jnp.float32)
    y3 = jax.block_until_ready(bilinear_pool(x3))
    assert y3.shape == (1, C * C)
    _check(y3, _ref(x3), 1e-3)

    print("KERNEL_OK")
</pallas_src>

<mosaic_0001>
module attributes {stable_mosaic.version = 11 : i64} {
  func.func @_gram_kernel_batched(%arg0: i32, %arg1: memref<2x512x64xf32, #tpu.memory_space<vmem>>, %arg2: memref<2x512x512xf32, #tpu.memory_space<vmem>>) attributes {dimension_semantics = [#tpu.dimension_semantics<parallel>], iteration_bounds = array<i64: 1>, scalar_prefetch = 0 : i64, scratch_operands = 0 : i64, tpu.core_type = #tpu.core_type<tc>, window_params = [{transform_indices = @transform_0, window_bounds = array<i64: 2, 512, 64>}, {transform_indices = @transform_1, window_bounds = array<i64: 2, 512, 512>}]} {
    %c0 = arith.constant 0 : index
    %c0_0 = arith.constant 0 : index
    %c0_1 = arith.constant 0 : index
    %0 = vector.load %arg1[%c0, %c0_0, %c0_1] : memref<2x512x64xf32, #tpu.memory_space<vmem>>, vector<2x512x64xf32>
    %1 = arith.truncf %0 : vector<2x512x64xf32> to vector<2x512x64xbf16>
    %cst = arith.constant dense<0.000000e+00> : vector<2x512x512xf32>
    %2 = tpu.matmul %1, %1, %cst {dimension_numbers = #tpu.dot_dimension_numbers<[2], [2], [1], [1], [0, 0, 0, 1, 1, 1], [0], [0]>} : vector<2x512x64xbf16>, vector<2x512x64xbf16>, vector<2x512x512xf32> -> vector<2x512x512xf32>
    %c0_2 = arith.constant 0 : index
    %c0_3 = arith.constant 0 : index
    %c0_4 = arith.constant 0 : index
    %3 = vector.load %arg2[%c0_2, %c0_3, %c0_4] : memref<2x512x512xf32, #tpu.memory_space<vmem>>, vector<2x512x512xf32>
    tpu.vector_store %arg2[%c0_2, %c0_3, %c0_4], %2 {strides = array<i32>} : memref<2x512x512xf32, #tpu.memory_space<vmem>>, vector<2x512x512xf32>,
    return
  }
  func.func @transform_0(%arg0: i32) -> (i32, i32, i32) {
    %c0_i32 = arith.constant 0 : i32
    %c0_i32_0 = arith.constant 0 : i32
    %c0_i32_1 = arith.constant 0 : i32
    return %arg0, %c0_i32, %c0_i32_0 : i32, i32, i32
  }
  func.func @transform_1(%arg0: i32) -> (i32, i32, i32) {
    %c0_i32 = arith.constant 0 : i32
    %c0_i32_0 = arith.constant 0 : i32
    %c0_i32_1 = arith.constant 0 : i32
    return %arg0, %c0_i32, %c0_i32_0 : i32, i32, i32
  }
}

</mosaic_0001>

<bundles_post_ra>
// kernel: tpu_custom_call.1
= control target key start
LH: loop header
LB: loop body
LE: loop exit
PB: predicated region body
PF: predicated region fallthrough
CT: control target
= control target key end

     0   :  { %vm202_vm0 = vcmask 523264   ;;  %s4019_s0 = inlined_call_operand.vmem [shape: f32[2,512,64], index: 0, kind: input, shape index: {}]   ;;  %s4020_s1 = inlined_call_operand.hbm [shape: f32[2,512,512], index: 1, kind: output, shape index: {}]  }
   0x1   :  { %v26_v0 = vld [vmem:[%s4019_s0 + $0x80] sm:$0xff]  ;;  %v27_v1 = vld [vmem:[%s4019_s0 + $0x88] sm:$0xff]  ;;  %v28_v11 = vld [vmem:[%s4019_s0 + $0x90] sm:$0xff] }
   0x2   :  { %v58_v2 = vld [vmem:[%s4019_s0 + $0x180] sm:$0xff]  ;;  %v2864_v3 = vpack.c.bf16 %v27_v1, %v26_v0  ;;  %v59_v4 = vld [vmem:[%s4019_s0 + $0x188] sm:$0xff]  ;;  %v29_v13 = vld [vmem:[%s4019_s0 + $0x98] sm:$0xff] }
   0x3   :  { %v10_v5 = vld [vmem:[%s4019_s0] sm:$0xff]  ;;  %v11_v6 = vld [vmem:[%s4019_s0 + $0x8] sm:$0xff]  ;;  %v2875_v7 = vpack.c.bf16 %v59_v4, %v58_v2  ;;  %v60_v14 = vld [vmem:[%s4019_s0 + $0x190] sm:$0xff]  ;;  %v2905_v17 = vpack.c.bf16 %v29_v13, %v28_v11 }
   0x4   :  { %v2877_v8 = vpack.c.bf16 %v11_v6, %v10_v5  ;;  %v42_v9 = vld [vmem:[%s4019_s0 + $0x100] sm:$0xff]  ;;  %v43_v10 = vld [vmem:[%s4019_s0 + $0x108] sm:$0xff]  ;;  %2783 = vmatprep.subr.msk.bf16.mxu0 %vm202_vm0, %v2864_v3  ;;  %v61_v15 = vld [vmem:[%s4019_s0 + $0x198] sm:$0xff] }
   0x5   :  { %v2890_v12 = vpack.c.bf16 %v43_v10, %v42_v9  ;;  %2791 = vmatprep.subr.msk.bf16.mxu1 %vm202_vm0, %v2875_v7  ;;  %v2907_v18 = vpack.c.bf16 %v61_v15, %v60_v14  ;;  %v12_v19 = vld [vmem:[%s4019_s0 + $0x10] sm:$0xff]  ;;  %v13_v20 = vld [vmem:[%s4019_s0 + $0x18] sm:$0xff]  ;;  %v30_v26 = vld [vmem:[%s4019_s0 + $0xa0] sm:$0xff] }
   0x6   :  { %v204_v16 = vsel %vm202_vm0, %v2877_v8, 0  ;;  %v44_v21 = vld [vmem:[%s4019_s0 + $0x110] sm:$0xff]  ;;  %2479 = vmatprep.mubr.msk.bf16.mxu0 %vm202_vm0, %v2877_v8  ;;  %v45_v23 = vld [vmem:[%s4019_s0 + $0x118] sm:$0xff]  ;;  %2559 = vmatprep.mubr.msk.bf16.mxu1 %vm202_vm0, %v2877_v8  ;;  %v2929_v24 = vpack.c.bf16 %v13_v20, %v12_v19  ;;  %v31_v27 = vld [vmem:[%s4019_s0 + $0xa8] sm:$0xff] }
   0x7   :  { %2464 = vmatpush3.bf16.xpose.msra.mxu0 %v204_v16  ;;  %v252_v22 = vsel %vm202_vm0, %v2890_v12, 0  ;;  %v2933_v25 = vpack.c.bf16 %v45_v23, %v44_v21  ;;  %v62_v28 = vld [vmem:[%s4019_s0 + $0x1a0] sm:$0xff]  ;;  %v63_v29 = vld [vmem:[%s4019_s0 + $0x1a8] sm:$0xff]  ;;  %v2949_v31 = vpack.c.bf16 %v31_v27, %v30_v26  ;;  %v32_v40 = vld [vmem:[%s4019_s0 + $0xb0] sm:$0xff] }
   0x8   :  { %2544 = vmatpush3.bf16.xpose.msra.mxu1 %v252_v22  ;;  %2784 = vmatprep.subr.msk.bf16.mxu0 %vm202_vm0, %v2905_v17  ;;  %v207_v30 = vsel %vm202_vm0, %v2929_v24, 0  ;;  %v2953_v33 = vpack.c.bf16 %v63_v29, %v62_v28  ;;  %v14_v34 = vld [vmem:[%s4019_s0 + $0x20] sm:$0xff]  ;;  %v15_v35 = vld [vmem:[%s4019_s0 + $0x28] sm:$0xff]  ;;  %v33_v41 = vld [vmem:[%s4019_s0 + $0xb8] sm:$0xff] }
   0x9   :  { %2792 = vmatprep.subr.msk.bf16.mxu1 %vm202_vm0, %v2907_v18  ;;  %v255_v32 = vsel %vm202_vm0, %v2933_v25, 0  ;;  %v46_v36 = vld [vmem:[%s4019_s0 + $0x120] sm:$0xff]  ;;  %v47_v37 = vld [vmem:[%s4019_s0 + $0x128] sm:$0xff]  ;;  %v2969_v38 = vpack.c.bf16 %v15_v35, %v14_v34  ;;  %v64_v42 = vld [vmem:[%s4019_s0 + $0x1b0] sm:$0xff]  ;;  %v2989_v45 = vpack.c.bf16 %v33_v41, %v32_v40 }
   0xa   :  { %v2973_v39 = vpack.c.bf16 %v47_v37, %v46_v36  ;;  %v65_v43 = vld [vmem:[%s4019_s0 + $0x1b8] sm:$0xff]  ;;  %v16_v48 = vld [vmem:[%s4019_s0 + $0x30] sm:$0xff]  ;;  %v34_v54 = vld [vmem:[%s4019_s0 + $0xc0] sm:$0xff] }
   0xb   :  { %v210_v44 = vsel %vm202_vm0, %v2969_v38, 0  ;;  %v2993_v47 = vpack.c.bf16 %v65_v43, %v64_v42  ;;  %v17_v49 = vld [vmem:[%s4019_s0 + $0x38] sm:$0xff]  ;;  %v48_v50 = vld [vmem:[%s4019_s0 + $0x130] sm:$0xff]  ;;  %v35_v55 = vld [vmem:[%s4019_s0 + $0xc8] sm:$0xff] }
   0xc   :  { %v258_v46 = vsel %vm202_vm0, %v2973_v39, 0  ;;  %v49_v51 = vld [vmem:[%s4019_s0 + $0x138] sm:$0xff]  ;;  %v3009_v52 = vpack.c.bf16 %v17_v49, %v16_v48  ;;  %v66_v56 = vld [vmem:[%s4019_s0 + $0x1c0] sm:$0xff]  ;;  %v67_v57 = vld [vmem:[%s4019_s0 + $0x1c8] sm:$0xff]  ;;  %v3029_v59 = vpack.c.bf16 %v35_v55, %v34_v54 }
   0xd   :  { %v3013_v53 = vpack.c.bf16 %v49_v51, %v48_v50  ;;  %v3033_v61 = vpack.c.bf16 %v67_v57, %v66_v56  ;;  %v18_v62 = vld [vmem:[%s4019_s0 + $0x40] sm:$0xff]  ;;  %v19_v63 = vld [vmem:[%s4019_s0 + $0x48] sm:$0xff] }
   0xe   :  { %v213_v58 = vsel %vm202_vm0, %v3009_v52, 0  ;;  %v50_v0 = vld [vmem:[%s4019_s0 + $0x140] sm:$0xff]  ;;  %v51_v1 = vld [vmem:[%s4019_s0 + $0x148] sm:$0xff] }
   0xf   :  { %2466 = vmatpush3.bf16.xpose.msra.mxu0 %v207_v30  ;;  %v261_v60 = vsel %vm202_vm0, %v3013_v53, 0 }
  0x10   :  { %2546 = vmatpush3.bf16.xpose.msra.mxu1 %v255_v32  ;;  %2785 = vmatprep.subr.msk.bf16.mxu0 %vm202_vm0, %v2949_v31 }
  0x11   :  { %2793 = vmatprep.subr.msk.bf16.mxu1 %vm202_vm0, %v2953_v33 }
  0x17   :  { %2468 = vmatpush3.bf16.xpose.msra.mxu0 %v210_v44 }
  0x18   :  { %2548 = vmatpush3.bf16.xpose.msra.mxu1 %v258_v46  ;;  %2786 = vmatprep.subr.msk.bf16.mxu0 %vm202_vm0, %v2989_v45 }
  0x19   :  { %2794 = vmatprep.subr.msk.bf16.mxu1 %vm202_vm0, %v2993_v47 }
  0x1f   :  { %2470 = vmatpush3.bf16.xpose.msra.mxu0 %v213_v58 }
  0x20   :  { %6 = vsyncpa [#allocation3], 0  ;;  %2550 = vmatpush3.bf16.xpose.msra.mxu1 %v261_v60  ;;  %2787 = vmatprep.subr.msk.bf16.mxu0 %vm202_vm0, %v3029_v59  ;;  %v3049_v2 = vpack.c.bf16 %v19_v63, %v18_v62  ;;  %v3053_v4 = vpack.c.bf16 %v51_v1, %v50_v0  ;;  %v36_v5 = vld [vmem:[%s4019_s0 + $0xd0] sm:$0xff]  ;;  %v37_v6 = vld [vmem:[%s4019_s0 + $0xd8] sm:$0xff] }
  0x21   :  { %2795 = vmatprep.subr.msk.bf16.mxu1 %vm202_vm0, %v3033_v61  ;;  %v68_v9 = vld [vmem:[%s4019_s0 + $0x1d0] sm:$0xff]  ;;  %v69_v10 = vld [vmem:[%s4019_s0 + $0x1d8] sm:$0xff]  ;;  %v3069_v13 = vpack.c.bf16 %v37_v6, %v36_v5  ;;  %v38_v26 = vld [vmem:[%s4019_s0 + $0xe0] sm:$0xff] }
  0x22   :  { %v216_v11 = vsel %vm202_vm0, %v3049_v2, 0  ;;  %v264_v14 = vsel %vm202_vm0, %v3053_v4, 0  ;;  %v3073_v15 = vpack.c.bf16 %v69_v10, %v68_v9  ;;  %v20_v16 = vld [vmem:[%s4019_s0 + $0x50] sm:$0xff]  ;;  %v21_v19 = vld [vmem:[%s4019_s0 + $0x58] sm:$0xff]  ;;  %v39_v27 = vld [vmem:[%s4019_s0 + $0xe8] sm:$0xff] }
  0x23   :  { %v52_v20 = vld [vmem:[%s4019_s0 + $0x150] sm:$0xff]  ;;  %v53_v21 = vld [vmem:[%s4019_s0 + $0x158] sm:$0xff]  ;;  %v3089_v22 = vpack.c.bf16 %v21_v19, %v20_v16  ;;  %v70_v28 = vld [vmem:[%s4019_s0 + $0x1e0] sm:$0xff]  ;;  %v3109_v32 = vpack.c.bf16 %v39_v27, %v38_v26 }
  0x24   :  { %v3093_v23 = vpack.c.bf16 %v53_v21, %v52_v20  ;;  %v71_v29 = vld [vmem:[%s4019_s0 + $0x1e8] sm:$0xff]  ;;  %v22_v36 = vld [vmem:[%s4019_s0 + $0x60] sm:$0xff]  ;;  %v40_v44 = vld [vmem:[%s4019_s0 + $0xf0] sm:$0xff] }
  0x25   :  { %v219_v30 = vsel %vm202_vm0, %v3089_v22, 0  ;;  %v3113_v35 = vpack.c.bf16 %v71_v29, %v70_v28  ;;  %v23_v37 = vld [vmem:[%s4019_s0 + $0x68] sm:$0xff]  ;;  %v54_v40 = vld [vmem:[%s4019_s0 + $0x160] sm:$0xff]  ;;  %v41_v46 = vld [vmem:[%s4019_s0 + $0xf8] sm:$0xff] }
  0x26   :  { %v267_v34 = vsel %vm202_vm0, %v3093_v23, 0  ;;  %v55_v41 = vld [vmem:[%s4019_s0 + $0x168] sm:$0xff]  ;;  %v3129_v42 = vpack.c.bf16 %v23_v37, %v22_v36  ;;  %v72_v48 = vld [vmem:[%s4019_s0 + $0x1f0] sm:$0xff]  ;;  %v73_v49 = vld [vmem:[%s4019_s0 + $0x1f8] sm:$0xff]  ;;  %v3149_v51 = vpack.c.bf16 %v41_v46, %v40_v44 }
  0x27   :  { %2472 = vmatpush3.bf16.xpose.msra.mxu0 %v216_v11  ;;  %v3133_v43 = vpack.c.bf16 %v55_v41, %v54_v40  ;;  %v3153_v55 = vpack.c.bf16 %v73_v49, %v72_v48  ;;  %v24_v56 = vld [vmem:[%s4019_s0 + $0x70] sm:$0xff]  ;;  %v25_v57 = vld [vmem:[%s4019_s0 + $0x78] sm:$0xff]  ;;  %v90_v0 = vld [vmem:[%s4019_s0 + $0x280] sm:$0xff] }
  0x28   :  { %2552 = vmatpush3.bf16.xpose.msra.mxu1 %v264_v14  ;;  %2788 = vmatprep.subr.msk.bf16.mxu0 %vm202_vm0, %v3069_v13  ;;  %v222_v50 = vsel %vm202_vm0, %v3129_v42, 0  ;;  %v56_v58 = vld [vmem:[%s4019_s0 + $0x170] sm:$0xff]  ;;  %v57_v60 = vld [vmem:[%s4019_s0 + $0x178] sm:$0xff]  ;;  %v3169_v62 = vpack.c.bf16 %v25_v57, %v24_v56  ;;  %v91_v1 = vld [vmem:[%s4019_s0 + $0x288] sm:$0xff] }
  0x29   :  { %2796 = vmatprep.subr.msk.bf16.mxu1 %vm202_vm0, %v3073_v15  ;;  %v270_v54 = vsel %vm202_vm0, %v3133_v43, 0  ;;  %v3173_v63 = vpack.c.bf16 %v57_v60, %v56_v58  ;;  %v122_v5 = vld [vmem:[%s4019_s0 + $0x380] sm:$0xff]  ;;  %v123_v6 = vld [vmem:[%s4019_s0 + $0x388] sm:$0xff]  ;;  %v3189_v10 = vpack.c.bf16 %v91_v1, %v90_v0  ;;  %v92_v28 = vld [vmem:[%s4019_s0 + $0x290] sm:$0xff] }
  0x2a   :  { %v225_v9 = vsel %vm202_vm0, %v3169_v62, 0  ;;  %v3193_v14 = vpack.c.bf16 %v123_v6, %v122_v5  ;;  %v74_v16 = vld [vmem:[%s4019_s0 + $0x200] sm:$0xff]  ;;  %v75_v19 = vld [vmem:[%s4019_s0 + $0x208] sm:$0xff]  ;;  %v93_v29 = vld [vmem:[%s4019_s0 + $0x298] sm:$0xff] }
  0x2b   :  { %v273_v11 = vsel %vm202_vm0, %v3173_v63, 0  ;;  %v106_v20 = vld [vmem:[%s4019_s0 + $0x300] sm:$0xff]  ;;  %v107_v21 = vld [vmem:[%s4019_s0 + $0x308] sm:$0xff]  ;;  %v3209_v26 = vpack.c.bf16 %v75_v19, %v74_v16  ;;  %v3231_v40 = vpack.c.bf16 %v93_v29, %v92_v28  ;;  %v76_v44 = vld [vmem:[%s4019_s0 + $0x210] sm:$0xff] }
  0x2c   :  { %v3213_v27 = vpack.c.bf16 %v107_v21, %v106_v20  ;;  %v77_v46 = vld [vmem:[%s4019_s0 + $0x218] sm:$0xff]  ;;  %v108_v48 = vld [vmem:[%s4019_s0 + $0x310] sm:$0xff]  ;;  %v95_v56 = vld [vmem:[%s4019_s0 + $0x2a8] sm:$0xff] }
  0x2d   :  { %v1006_v36 = vsel %vm202_vm0, %v3209_v26, 0  ;;  %v109_v49 = vld [vmem:[%s4019_s0 + $0x318] sm:$0xff]  ;;  %v126_v57 = vld [vmem:[%s4019_s0 + $0x3a0] sm:$0xff]  ;;  %v127_v58 = vld [vmem:[%s4019_s0 + $0x3a8] sm:$0xff] }
  0x2e   :  { %v1054_v37 = vsel %vm202_vm0, %v3213_v27, 0  ;;  %v3283_v5 = vpack.c.bf16 %v127_v58, %v126_v57  ;;  %v78_v6 = vld [vmem:[%s4019_s0 + $0x220] sm:$0xff]  ;;  %v111_v16 = vld [vmem:[%s4019_s0 + $0x328] sm:$0xff]  ;;  %v96_v20 = vld [vmem:[%s4019_s0 + $0x2b0] sm:$0xff] }
  0x2f   :  { %2474 = vmatpush3.bf16.xpose.msra.mxu0 %v219_v30  ;;  %v124_v30 = vld [vmem:[%s4019_s0 + $0x390] sm:$0xff]  ;;  %v97_v21 = vld [vmem:[%s4019_s0 + $0x2b8] sm:$0xff]  ;;  %v99_v57 = vld [vmem:[%s4019_s0 + $0x2c8] sm:$0xff] }
  0x30   :  { %2554 = vmatpush3.bf16.xpose.msra.mxu1 %v267_v34  ;;  %2789 = vmatprep.subr.msk.bf16.mxu0 %vm202_vm0, %v3109_v32  ;;  %v125_v34 = vld [vmem:[%s4019_s0 + $0x398] sm:$0xff]  ;;  %v128_v28 = vld [vmem:[%s4019_s0 + $0x3b0] sm:$0xff]  ;;  %v130_v58 = vld [vmem:[%s4019_s0 + $0x3c0] sm:$0xff] }
  0x31   :  { %2797 = vmatprep.subr.msk.bf16.mxu1 %vm202_vm0, %v3113_v35  ;;  %v3235_v41 = vpack.c.bf16 %v125_v34, %v124_v30  ;;  %v129_v29 = vld [vmem:[%s4019_s0 + $0x3b8] sm:$0xff]  ;;  %v3325_v34 = vpack.c.bf16 %v97_v21, %v96_v20  ;;  %v83_v20 = vld [vmem:[%s4019_s0 + $0x248] sm:$0xff]  ;;  %v114_v21 = vld [vmem:[%s4019_s0 + $0x340] sm:$0xff] }
  0x37   :  { %2476 = vmatpush3.bf16.xpose.msra.mxu0 %v222_v50  ;;  %v3261_v50 = vpack.c.bf16 %v109_v49, %v108_v48  ;;  %v112_v48 = vld [vmem:[%s4019_s0 + $0x330] sm:$0xff]  ;;  %v113_v49 = vld [vmem:[%s4019_s0 + $0x338] sm:$0xff] }
  0x38   :  { %2556 = vmatpush3.bf16.xpose.msra.mxu1 %v270_v54  ;;  %2790 = vmatprep.subr.msk.bf16.mxu0 %vm202_vm0, %v3149_v51  ;;  %v94_v54 = vld [vmem:[%s4019_s0 + $0x2a0] sm:$0xff] }
  0x39   :  { %2798 = vmatprep.subr.msk.bf16.mxu1 %vm202_vm0, %v3153_v55  ;;  %v3277_v0 = vpack.c.bf16 %v95_v56, %v94_v54  ;;  %v1057_v1 = vsel %vm202_vm0, %v3261_v50, 0  ;;  %v3357_v54 = vpack.c.bf16 %v113_v49, %v112_v48  ;;  %v98_v56 = vld [vmem:[%s4019_s0 + $0x2c0] sm:$0xff]  ;;  %v132_v48 = vld [vmem:[%s4019_s0 + $0x3d0] sm:$0xff]  ;;  %v133_v49 = vld [vmem:[%s4019_s0 + $0x3d8] sm:$0xff] }
  0x3f   :  { %2478 = vmatpush3.bf16.xpose.msra.mxu0 %v225_v9  ;;  %v79_v9 = vld [vmem:[%s4019_s0 + $0x228] sm:$0xff] }
  0x40   :  { %2558 = vmatpush3.bf16.xpose.msra.mxu1 %v273_v11  ;;  %2799 = vmatprep.subr.msk.bf16.mxu0 %vm202_vm0, %v3189_v10  ;;  %v110_v11 = vld [vmem:[%s4019_s0 + $0x320] sm:$0xff] }
  0x41   :  { %2807 = vmatprep.subr.msk.bf16.mxu1 %vm202_vm0, %v3193_v14  ;;  %v3309_v19 = vpack.c.bf16 %v111_v16, %v110_v11  ;;  %v82_v16 = vld [vmem:[%s4019_s0 + $0x240] sm:$0xff] }
  0x46   :  { %2480 = vmatmul.mubr.msk.bf16.vlgmr.msra.gmra.mrb[0].mxu0 %vm202_vm0, %v2877_v8 }
  0x47   :  { %2560 = vmatmul.mubr.msk.bf16.vlgmr.msra.gmra.mrb[0].mxu1 %vm202_vm0, %v2877_v8  ;;  %2624 = vmatpush3.bf16.xpose.msra.mxu0 %v1006_v36  ;;  %v3257_v8 = vpack.c.bf16 %v77_v46, %v76_v44  ;;  %v1060_v36 = vsel %vm202_vm0, %v3309_v19, 0  ;;  %v80_v44 = vld [vmem:[%s4019_s0 + $0x230] sm:$0xff]  ;;  %v81_v46 = vld [vmem:[%s4019_s0 + $0x238] sm:$0xff] }
  0x48   :  { %2704 = vmatpush3.bf16.xpose.msra.mxu1 %v1054_v37  ;;  %2481 = vmatprep.mubr.msk.bf16.mxu0 %vm202_vm0, %v2929_v24  ;;  %v3331_v37 = vpack.c.bf16 %v129_v29, %v128_v28  ;;  %v115_v28 = vld [vmem:[%s4019_s0 + $0x348] sm:$0xff] }
  0x49   :  { %2561 = vmatprep.mubr.msk.bf16.mxu1 %vm202_vm0, %v2929_v24  ;;  %2800 = vmatprep.subr.msk.bf16.mxu0 %vm202_vm0, %v3231_v40  ;;  %v1009_v60 = vsel %vm202_vm0, %v3257_v8, 0  ;;  %v3405_v29 = vpack.c.bf16 %v115_v28, %v114_v21 }
  0x4a   :  { %2808 = vmatprep.subr.msk.bf16.mxu1 %vm202_vm0, %v3235_v41 }
  0x4e   :  { %2482 = vmatmul.mubr.msk.bf16.gmra.mrb[4].mxu0 %vm202_vm0, %v2929_v24 }
  0x4f   :  { %2562 = vmatmul.mubr.msk.bf16.gmra.mrb[4].mxu1 %vm202_vm0, %v2929_v24  ;;  %2483 = vmatprep.mubr.msk.bf16.mxu0 %vm202_vm0, %v2969_v38  ;;  %v3305_v24 = vpack.c.bf16 %v79_v9, %v78_v6  ;;  %v3373_v6 = vpack.c.bf16 %v99_v57, %v98_v56  ;;  %v1063_v9 = vsel %vm202_vm0, %v3357_v54, 0  ;;  %v84_v56 = vld [vmem:[%s4019_s0 + $0x250] sm:$0xff]  ;;  %v85_v57 = vld [vmem:[%s4019_s0 + $0x258] sm:$0xff] }
  0x50   :  { %2563 = vmatprep.mubr.msk.bf16.mxu1 %vm202_vm0, %v2969_v38  ;;  %2626 = vmatpush3.bf16.xpose.msra.mxu0 %v1009_v60  ;;  %v131_v60 = vld [vmem:[%s4019_s0 + $0x3c8] sm:$0xff] }
  0x51   :  { %2706 = vmatpush3.bf16.xpose.msra.mxu1 %v1057_v1  ;;  %2801 = vmatprep.subr.msk.bf16.mxu0 %vm202_vm0, %v3277_v0  ;;  %v1012_v30 = vsel %vm202_vm0, %v3305_v24, 0  ;;  %v3379_v11 = vpack.c.bf16 %v131_v60, %v130_v58  ;;  %v3439_v58 = vpack.c.bf16 %v133_v49, %v132_v48  ;;  %v3441_v60 = vpack.c.bf16 %v85_v57, %v84_v56  ;;  %v118_v48 = vld [vmem:[%s4019_s0 + $0x360] sm:$0xff]  ;;  %v119_v49 = vld [vmem:[%s4019_s0 + $0x368] sm:$0xff] }
  0x52   :  { %2809 = vmatprep.subr.msk.bf16.mxu1 %vm202_vm0, %v3283_v5  ;;  %v3523_v56 = vpack.c.bf16 %v119_v49, %v118_v48 }
  0x56   :  { %2484 = vmatmul.mubr.msk.bf16.gmra.mrb[8].mxu0 %vm202_vm0, %v2969_v38 }
  0x57   :  { %2564 = vmatmul.mubr.msk.bf16.gmra.mrb[8].mxu1 %vm202_vm0, %v2969_v38  ;;  %2485 = vmatprep.mubr.msk.bf16.mxu0 %vm202_vm0, %v3009_v52  ;;  %v3353_v38 = vpack.c.bf16 %v81_v46, %v80_v44  ;;  %v100_v44 = vld [vmem:[%s4019_s0 + $0x2d0] sm:$0xff]  ;;  %v101_v46 = vld [vmem:[%s4019_s0 + $0x2d8] sm:$0xff] }
  0x58   :  { %2565 = vmatprep.mubr.msk.bf16.mxu1 %vm202_vm0, %v3009_v52  ;;  %2628 = vmatpush3.bf16.xpose.msra.mxu0 %v1012_v30 }
  0x59   :  { %2708 = vmatpush3.bf16.xpose.msra.mxu1 %v1060_v36  ;;  %2802 = vmatprep.subr.msk.bf16.mxu0 %vm202_vm0, %v3325_v34  ;;  %v1015_v1 = vsel %vm202_vm0, %v3353_v38, 0  ;;  %v1066_v36 = vsel %vm202_vm0, %v3405_v29, 0 }
  0x5a   :  { %2810 = vmatprep.subr.msk.bf16.mxu1 %vm202_vm0, %v3331_v37 }
  0x5e   :  { %2486 = vmatmul.mubr.msk.bf16.gmra.mrb[12].mxu0 %vm202_vm0, %v3009_v52 }
  0x5f   :  { %2566 = vmatmul.mubr.msk.bf16.gmra.mrb[12].mxu1 %vm202_vm0, %v3009_v52  ;;  %2487 = vmatprep.mubr.msk.bf16.mxu0 %vm202_vm0, %v3049_v2  ;;  %v3401_v52 = vpack.c.bf16 %v83_v20, %v82_v16  ;;  %v1021_v20 = vsel %vm202_vm0, %v3441_v60, 0 }
  0x60   :  { %2567 = vmatprep.mubr.msk.bf16.mxu1 %vm202_vm0, %v3049_v2  ;;  %2630 = vmatpush3.bf16.xpose.msra.mxu0 %v1015_v1  ;;  %v116_v1 = vld [vmem:[%s4019_s0 + $0x350] sm:$0xff] }
  0x61   :  { %2710 = vmatpush3.bf16.xpose.msra.mxu1 %v1063_v9  ;;  %2803 = vmatprep.subr.msk.bf16.mxu0 %vm202_vm0, %v3373_v6  ;;  %v1018_v30 = vsel %vm202_vm0, %v3401_v52, 0  ;;  %v117_v9 = vld [vmem:[%s4019_s0 + $0x358] sm:$0xff] }
  0x62   :  { %2811 = vmatprep.subr.msk.bf16.mxu1 %vm202_vm0, %v3379_v11  ;;  %v3451_v16 = vpack.c.bf16 %v117_v9, %v116_v1  ;;  %v1072_v1 = vsel %vm202_vm0, %v3523_v56, 0 }
  0x64   :  { %v1069_v21 = vsel %vm202_vm0, %v3451_v16, 0 }
  0x66   :  { %2488 = vmatmul.mubr.msk.bf16.gmra.mrb[16].mxu0 %vm202_vm0, %v3049_v2 }
  0x67   :  { %2568 = vmatmul.mubr.msk.bf16.gmra.mrb[16].mxu1 %vm202_vm0, %v3049_v2  ;;  %2489 = vmatprep.mubr.msk.bf16.mxu0 %vm202_vm0, %v3089_v22  ;;  %v3428_v2 = vpack.c.bf16 %v101_v46, %v100_v44 }
  0x68   :  { %2569 = vmatprep.mubr.msk.bf16.mxu1 %vm202_vm0, %v3089_v22  ;;  %2632 = vmatpush3.bf16.xpose.msra.mxu0 %v1018_v30  ;;  %v86_v30 = vld [vmem:[%s4019_s0 + $0x260] sm:$0xff] }
  0x69   :  { %2712 = vmatpush3.bf16.xpose.msra.mxu1 %v1066_v36  ;;  %2804 = vmatprep.subr.msk.bf16.mxu0 %vm202_vm0, %v3428_v2  ;;  %v87_v36 = vld [vmem:[%s4019_s0 + $0x268] sm:$0xff] }
  0x6a   :  { %2812 = vmatprep.subr.msk.bf16.mxu1 %vm202_vm0, %v3439_v58  ;;  %v3513_v46 = vpack.c.bf16 %v87_v36, %v86_v30 }
  0x6c   :  { %v1024_v57 = vsel %vm202_vm0, %v3513_v46, 0 }
  0x6e   :  { %2490 = vmatmul.mubr.msk.bf16.gmra.mrb[20].mxu0 %vm202_vm0, %v3089_v22 }
  0x6f   :  { %2570 = vmatmul.mubr.msk.bf16.gmra.mrb[20].mxu1 %vm202_vm0, %v3089_v22  ;;  %2491 = vmatprep.mubr.msk.bf16.mxu0 %vm202_vm0, %v3129_v42  ;;  %v102_v22 = vld [vmem:[%s4019_s0 + $0x2e0] sm:$0xff] }
  0x70   :  { %2571 = vmatprep.mubr.msk.bf16.mxu1 %vm202_vm0, %v3129_v42  ;;  %2634 = vmatpush3.bf16.xpose.msra.mxu0 %v1021_v20  ;;  %v88_v20 = vld [vmem:[%s4019_s0 + $0x270] sm:$0xff] }
  0x71   :  { %2714 = vmatpush3.bf16.xpose.msra.mxu1 %v1069_v21  ;;  %v89_v21 = vld [vmem:[%s4019_s0 + $0x278] sm:$0xff] }
  0x76   :  { %2492 = vmatmul.mubr.msk.bf16.gmra.mrb[24].mxu0 %vm202_vm0, %v3129_v42 }
  0x77   :  { %2572 = vmatmul.mubr.msk.bf16.gmra.mrb[24].mxu1 %vm202_vm0, %v3129_v42  ;;  %2493 = vmatprep.mubr.msk.bf16.mxu0 %vm202_vm0, %v3169_v62  ;;  %v103_v42 = vld [vmem:[%s4019_s0 + $0x2e8] sm:$0xff] }
  0x78   :  { %2573 = vmatprep.mubr.msk.bf16.mxu1 %vm202_vm0, %v3169_v62  ;;  %v3500_v28 = vpack.c.bf16 %v103_v42, %v102_v22  ;;  %v3585_v42 = vpack.c.bf16 %v89_v21, %v88_v20 }
  0x7a   :  { %2805 = vmatprep.subr.msk.bf16.mxu0 %vm202_vm0, %v3500_v28  ;;  %v1027_v36 = vsel %vm202_vm0, %v3585_v42, 0 }
  0x7b   :  { %2636 = vmatpush3.bf16.xpose.msra.mxu0 %v1024_v57 }
  0x7e   :  { %2494 = vmatmul.mubr.msk.bf16.gmra.mrb[28].mxu0 %vm202_vm0, %v3169_v62 }
  0x7f   :  { %2574 = vmatmul.mubr.msk.bf16.gmra.mrb[28].mxu1 %vm202_vm0, %v3169_v62  ;;  %2495 = vmatprep.mubr.msk.bf16.mxu0 %vm202_vm0, %v2864_v3  ;;  %v134_v62 = vld [vmem:[%s4019_s0 + $0x3e0] sm:$0xff] }
  0x80   :  { %2575 = vmatprep.mubr.msk.bf16.mxu1 %vm202_vm0, %v2864_v3 }
  0x86   :  { %2496 = vmatmul.mubr.msk.bf16.gmra.mrb[32].mxu0 %vm202_vm0, %v2864_v3 }
  0x87   :  { %2576 = vmatmul.mubr.msk.bf16.gmra.mrb[32].mxu1 %vm202_vm0, %v2864_v3  ;;  %2497 = vmatprep.mubr.msk.bf16.mxu0 %vm202_vm0, %v2905_v17  ;;  %v135_v3 = vld [vmem:[%s4019_s0 + $0x3e8] sm:$0xff] }
  0x88   :  { %2577 = vmatprep.mubr.msk.bf16.mxu1 %vm202_vm0, %v2905_v17  ;;  %v3511_v44 = vpack.c.bf16 %v135_v3, %v134_v62  ;;  %v120_v62 = vld [vmem:[%s4019_s0 + $0x370] sm:$0xff]  ;;  %v121_v3 = vld [vmem:[%s4019_s0 + $0x378] sm:$0xff] }
  0x89   :  { %v3595_v30 = vpack.c.bf16 %v121_v3, %v120_v62 }
  0x8a   :  { %2813 = vmatprep.subr.msk.bf16.mxu1 %vm202_vm0, %v3511_v44 }
  0x8b   :  { %2716 = vmatpush3.bf16.xpose.msra.mxu1 %v1072_v1  ;;  %v1075_v48 = vsel %vm202_vm0, %v3595_v30, 0 }
  0x8e   :  { %2498 = vmatmul.mubr.msk.bf16.gmra.mrb[36].mxu0 %vm202_vm0, %v2905_v17 }
  0x8f   :  { %2578 = vmatmul.mubr.msk.bf16.gmra.mrb[36].mxu1 %vm202_vm0, %v2905_v17  ;;  %2499 = vmatprep.mubr.msk.bf16.mxu0 %vm202_vm0, %v2949_v31  ;;  %v104_v17 = vld [vmem:[%s4019_s0 + $0x2f0] sm:$0xff] }
  0x90   :  { %2579 = vmatprep.mubr.msk.bf16.mxu1 %vm202_vm0, %v2949_v31 }
  0x96   :  { %2500 = vmatmul.mubr.msk.bf16.gmra.mrb[40].mxu0 %vm202_vm0, %v2949_v31 }
  0x97   :  { %2580 = vmatmul.mubr.msk.bf16.gmra.mrb[40].mxu1 %vm202_vm0, %v2949_v31  ;;  %2501 = vmatprep.mubr.msk.bf16.mxu0 %vm202_vm0, %v2989_v45  ;;  %v105_v31 = vld [vmem:[%s4019_s0 + $0x2f8] sm:$0xff] }
  0x98   :  { %2581 = vmatprep.mubr.msk.bf16.mxu1 %vm202_vm0, %v2989_v45  ;;  %v3572_v9 = vpack.c.bf16 %v105_v31, %v104_v17 }
  0x9a   :  { %2806 = vmatprep.subr.msk.bf16.mxu0 %vm202_vm0, %v3572_v9 }
  0x9b   :  { %2638 = vmatpush3.bf16.xpose.msra.mxu0 %v1027_v36 }
  0x9e   :  { %2502 = vmatmul.mubr.msk.bf16.gmra.mrb[44].mxu0 %vm202_vm0, %v2989_v45 }
  0x9f   :  { %2582 = vmatmul.mubr.msk.bf16.gmra.mrb[44].mxu1 %vm202_vm0, %v2989_v45  ;;  %2503 = vmatprep.mubr.msk.bf16.mxu0 %vm202_vm0, %v3029_v59  ;;  %v136_v45 = vld [vmem:[%s4019_s0 + $0x3f0] sm:$0xff] }
  0xa0   :  { %2583 = vmatprep.mubr.msk.bf16.mxu1 %vm202_vm0, %v3029_v59 }
  0xa6   :  { %2504 = vmatmul.mubr.msk.bf16.gmra.mrb[48].mxu0 %vm202_vm0, %v3029_v59 }
  0xa7   :  { %2584 = vmatmul.mubr.msk.bf16.gmra.mrb[48].mxu1 %vm202_vm0, %v3029_v59  ;;  %2505 = vmatprep.mubr.msk.bf16.mxu0 %vm202_vm0, %v3069_v13  ;;  %v137_v59 = vld [vmem:[%s4019_s0 + $0x3f8] sm:$0xff]  ;;  %s2842_s0 = smov [#allocation2]  }
  0xa8   :  { %2585 = vmatprep.mubr.msk.bf16.mxu1 %vm202_vm0, %v3069_v13  ;;  %v3583_v22 = vpack.c.bf16 %v137_v59, %v136_v45  ;;  %s2324_s30 = sshll.u32 %s2842_s0, 4  ;;  %s2325_s30 = int_to_ptr.vmem [resolvable:$true] %s2324_s30 }
  0xa9   :  { %s2818_s2 = scalar_lea.vmem %s2325_s30, 65536  ;;  %p2823_p1 = scmp.lt.s32.totalorder %s2325_s30, %s2325_s30 }
  0xaa   :  { %2814 = vmatprep.subr.msk.bf16.mxu1 %vm202_vm0, %v3583_v22  ;;  %p2819_p0 = scmp.ne.s32.totalorder %s2325_s30, %s2818_s2  ;;  %p2824_p2 = scmp.lt.s32.totalorder %s2818_s2, %s2818_s2 }
  0xab   :  { %2718 = vmatpush3.bf16.xpose.msra.mxu1 %v1075_v48 }
  0xac   :  { %p2825_p3 = por %p2824_p2, %p2823_p1 }
  0xae   :  { %2506 = vmatmul.mubr.msk.bf16.gmra.mrb[52].mxu0 %vm202_vm0, %v3069_v13  ;;  %p2826_p4 = pnand %p2825_p3, %p2819_p0 }
  0xaf   :  { %2586 = vmatmul.mubr.msk.bf16.gmra.mrb[52].mxu1 %vm202_vm0, %v3069_v13  ;;  %2507 = vmatprep.mubr.msk.bf16.mxu0 %vm202_vm0, %v3109_v32 }
  0xb0   :  { %2587 = vmatprep.mubr.msk.bf16.mxu1 %vm202_vm0, %v3109_v32 }
  0xb6   :  { %2508 = vmatmul.mubr.msk.bf16.gmra.mrb[56].mxu0 %vm202_vm0, %v3109_v32 }
  0xb7   :  { %2588 = vmatmul.mubr.msk.bf16.gmra.mrb[56].mxu1 %vm202_vm0, %v3109_v32  ;;  %2509 = vmatprep.mubr.msk.bf16.mxu0 %vm202_vm0, %v3149_v51 }
  0xb8   :  { %2589 = vmatprep.mubr.msk.bf16.mxu1 %vm202_vm0, %v3149_v51 }
  0xbe   :  { %2510 = vmatmul.mubr.msk.bf16.gmra.mrb[60].mxu0 %vm202_vm0, %v3149_v51 }
  0xbf   :  { %2590 = vmatmul.mubr.msk.bf16.gmra.mrb[60].mxu1 %vm202_vm0, %v3149_v51  ;;  %2511 = vmatprep.mubr.msk.bf16.mxu0 %vm202_vm0, %v2890_v12 }
  0xc0   :  { %2591 = vmatprep.mubr.msk.bf16.mxu1 %vm202_vm0, %v2890_v12 }
  0xc6   :  { %2512 = vmatmul.mubr.msk.bf16.gmra.mrb[64].mxu0 %vm202_vm0, %v2890_v12 }
  0xc7   :  { %2592 = vmatmul.mubr.msk.bf16.gmra.mrb[64].mxu1 %vm202_vm0, %v2890_v12  ;;  %2513 = vmatprep.mubr.msk.bf16.mxu0 %vm202_vm0, %v2933_v25 }
  0xc8   :  { %2593 = vmatprep.mubr.msk.bf16.mxu1 %vm202_vm0, %v2933_v25 }
  0xce   :  { %2514 = vmatmul.mubr.msk.bf16.gmra.mrb[68].mxu0 %vm202_vm0, %v2933_v25 }
  0xcf   :  { %2594 = vmatmul.mubr.msk.bf16.gmra.mrb[68].mxu1 %vm202_vm0, %v2933_v25  ;;  %2515 = vmatprep.mubr.msk.bf16.mxu0 %vm202_vm0, %v2973_v39 }
  0xd0   :  { %2595 = vmatprep.mubr.msk.bf16.mxu1 %vm202_vm0, %v2973_v39 }
  0xd6   :  { %2516 = vmatmul.mubr.msk.bf16.gmra.mrb[72].mxu0 %vm202_vm0, %v2973_v39 }
  0xd7   :  { %2596 = vmatmul.mubr.msk.bf16.gmra.mrb[72].mxu1 %vm202_vm0, %v2973_v39  ;;  %2517 = vmatprep.mubr.msk.bf16.mxu0 %vm202_vm0, %v3013_v53 }
  0xd8   :  { %2597 = vmatprep.mubr.msk.bf16.mxu1 %vm202_vm0, %v3013_v53 }
  0xde   :  { %2518 = vmatmul.mubr.msk.bf16.gmra.mrb[76].mxu0 %vm202_vm0, %v3013_v53 }
  0xdf   :  { %2598 = vmatmul.mubr.msk.bf16.gmra.mrb[76].mxu1 %vm202_vm0, %v3013_v53  ;;  %2519 = vmatprep.mubr.msk.bf16.mxu0 %vm202_vm0, %v3053_v4 }
  0xe0   :  { %2599 = vmatprep.mubr.msk.bf16.mxu1 %vm202_vm0, %v3053_v4 }
  0xe6   :  { %2520 = vmatmul.mubr.msk.bf16.gmra.mrb[80].mxu0 %vm202_vm0, %v3053_v4 }
  0xe7   :  { %2600 = vmatmul.mubr.msk.bf16.gmra.mrb[80].mxu1 %vm202_vm0, %v3053_v4  ;;  %2521 = vmatprep.mubr.msk.bf16.mxu0 %vm202_vm0, %v3093_v23 }
  0xe8   :  { %2601 = vmatprep.mubr.msk.bf16.mxu1 %vm202_vm0, %v3093_v23 }
  0xee   :  { %2522 = vmatmul.mubr.msk.bf16.gmra.mrb[84].mxu0 %vm202_vm0, %v3093_v23 }
  0xef   :  { %2602 = vmatmul.mubr.msk.bf16.gmra.mrb[84].mxu1 %vm202_vm0, %v3093_v23  ;;  %2523 = vmatprep.mubr.msk.bf16.mxu0 %vm202_vm0, %v3133_v43 }
  0xf0   :  { %2603 = vmatprep.mubr.msk.bf16.mxu1 %vm202_vm0, %v3133_v43 }
  0xf6   :  { %2524 = vmatmul.mubr.msk.bf16.gmra.mrb[88].mxu0 %vm202_vm0, %v3133_v43 }
  0xf7   :  { %2604 = vmatmul.mubr.msk.bf16.gmra.mrb[88].mxu1 %vm202_vm0, %v3133_v43  ;;  %2525 = vmatprep.mubr.msk.bf16.mxu0 %vm202_vm0, %v3173_v63 }
  0xf8   :  { %2605 = vmatprep.mubr.msk.bf16.mxu1 %vm202_vm0, %v3173_v63 }
  0xfe   :  { %2526 = vmatmul.mubr.msk.bf16.gmra.mrb[92].mxu0 %vm202_vm0, %v3173_v63 }
  0xff   :  { %2606 = vmatmul.mubr.msk.bf16.gmra.mrb[92].mxu1 %vm202_vm0, %v3173_v63  ;;  %2527 = vmatprep.mubr.msk.bf16.mxu0 %vm202_vm0, %v2875_v7 }
 0x100   :  { %2607 = vmatprep.mubr.msk.bf16.mxu1 %vm202_vm0, %v2875_v7 }
 0x106   :  { %2528 = vmatmul.mubr.msk.bf16.gmra.mrb[96].mxu0 %vm202_vm0, %v2875_v7 }
 0x107   :  { %2608 = vmatmul.mubr.msk.bf16.gmra.mrb[96].mxu1 %vm202_vm0, %v2875_v7  ;;  %2529 = vmatprep.mubr.msk.bf16.mxu0 %vm202_vm0, %v2907_v18 }
 0x108   :  { %2609 = vmatprep.mubr.msk.bf16.mxu1 %vm202_vm0, %v2907_v18 }
 0x10e   :  { %2530 = vmatmul.mubr.msk.bf16.gmra.mrb[100].mxu0 %vm202_vm0, %v2907_v18 }
 0x10f   :  { %2610 = vmatmul.mubr.msk.bf16.gmra.mrb[100].mxu1 %vm202_vm0, %v2907_v18  ;;  %2531 = vmatprep.mubr.msk.bf16.mxu0 %vm202_vm0, %v2953_v33 }
 0x110   :  { %2611 = vmatprep.mubr.msk.bf16.mxu1 %vm202_vm0, %v2953_v33 }
 0x116   :  { %2532 = vmatmul.mubr.msk.bf16.gmra.mrb[104].mxu0 %vm202_vm0, %v2953_v33 }
 0x117   :  { %2612 = vmatmul.mubr.msk.bf16.gmra.mrb[104].mxu1 %vm202_vm0, %v2953_v33  ;;  %2533 = vmatprep.mubr.msk.bf16.mxu0 %vm202_vm0, %v2993_v47 }
 0x118   :  { %2613 = vmatprep.mubr.msk.bf16.mxu1 %vm202_vm0, %v2993_v47 }
 0x119   :  { %v333_v7 = vpop.f32.mrb[0].mxu0 }
 0x11a   :  { %1807 = vst [vmem:[#allocation2] sm:$0xff] %v333_v7  ;;  %v686_v12 = vpop.f32.mrb[0].mxu1  ;;  %v335_v18 = vpop.f32.mrb[1].mxu0 }
 0x11b   :  { %1809 = vst [vmem:[#allocation2 + $0x10] sm:$0xff] %v686_v12  ;;  %1808 = vst [vmem:[#allocation2 + $0x8] sm:$0xff] %v335_v18  ;;  %v688_v25 = vpop.f32.mrb[1].mxu1  ;;  %v337_v39 = vpop.f32.mrb[2].mxu0 }
 0x11c   :  { %1810 = vst [vmem:[#allocation2 + $0x18] sm:$0xff] %v688_v25  ;;  %1811 = vst [vmem:[#allocation2 + $0x20] sm:$0xff] %v337_v39  ;;  %v690_v53 = vpop.f32.mrb[2].mxu1  ;;  %v339_v4 = vpop.f32.mrb[3].mxu0 }
 0x11d   :  { %1813 = vst [vmem:[#allocation2 + $0x30] sm:$0xff] %v690_v53  ;;  %1812 = vst [vmem:[#allocation2 + $0x28] sm:$0xff] %v339_v4  ;;  %v692_v33 = vpop.f32.mrb[3].mxu1 }
 0x11e   :  { %1814 = vst [vmem:[#allocation2 + $0x38] sm:$0xff] %v692_v33  ;;  %2534 = vmatmul.mubr.msk.bf16.gmra.mrb[108].mxu0 %vm202_vm0, %v2993_v47 }
 0x11f   :  { %2614 = vmatmul.mubr.msk.bf16.gmra.mrb[108].mxu1 %vm202_vm0, %v2993_v47  ;;  %2535 = vmatprep.mubr.msk.bf16.mxu0 %vm202_vm0, %v3033_v61 }
 0x120   :  { %2615 = vmatprep.mubr.msk.bf16.mxu1 %vm202_vm0, %v3033_v61 }
 0x121   :  { %v343_v13 = vpop.f32.mrb[4].mxu0 }
 0x122   :  { %1815 = vst [vmem:[#allocation2 + $0x40] sm:$0xff] %v343_v13  ;;  %v696_v23 = vpop.f32.mrb[4].mxu1  ;;  %v345_v32 = vpop.f32.mrb[5].mxu0 }
 0x123   :  { %1817 = vst [vmem:[#allocation2 + $0x50] sm:$0xff] %v696_v23  ;;  %1816 = vst [vmem:[#allocation2 + $0x48] sm:$0xff] %v345_v32  ;;  %v698_v43 = vpop.f32.mrb[5].mxu1  ;;  %v347_v51 = vpop.f32.mrb[6].mxu0 }
 0x124   :  { %1818 = vst [vmem:[#allocation2 + $0x58] sm:$0xff] %v698_v43  ;;  %1819 = vst [vmem:[#allocation2 + $0x60] sm:$0xff] %v347_v51  ;;  %v700_v63 = vpop.f32.mrb[6].mxu1  ;;  %v349_v49 = vpop.f32.mrb[7].mxu0 }
 0x125   :  { %1821 = vst [vmem:[#allocation2 + $0x70] sm:$0xff] %v700_v63  ;;  %1820 = vst [vmem:[#allocation2 + $0x68] sm:$0xff] %v349_v49  ;;  %v702_v47 = vpop.f32.mrb[7].mxu1 }
 0x126   :  { %1822 = vst [vmem:[#allocation2 + $0x78] sm:$0xff] %v702_v47  ;;  %2536 = vmatmul.mubr.msk.bf16.gmra.mrb[112].mxu0 %vm202_vm0, %v3033_v61 }
 0x127   :  { %2616 = vmatmul.mubr.msk.bf16.gmra.mrb[112].mxu1 %vm202_vm0, %v3033_v61  ;;  %2537 = vmatprep.mubr.msk.bf16.mxu0 %vm202_vm0, %v3073_v15 }
 0x128   :  { %2617 = vmatprep.mubr.msk.bf16.mxu1 %vm202_vm0, %v3073_v15 }
 0x129   :  { %v353_v57 = vpop.f32.mrb[8].mxu0 }
 0x12a   :  { %1823 = vst [vmem:[#allocation2 + $0x80] sm:$0xff] %v353_v57  ;;  %v706_v1 = vpop.f32.mrb[8].mxu1  ;;  %v355_v17 = vpop.f32.mrb[9].mxu0 }
 0x12b   :  { %1825 = vst [vmem:[#allocation2 + $0x90] sm:$0xff] %v706_v1  ;;  %1824 = vst [vmem:[#allocation2 + $0x88] sm:$0xff] %v355_v17  ;;  %v708_v31 = vpop.f32.mrb[9].mxu1  ;;  %v357_v45 = vpop.f32.mrb[10].mxu0 }
 0x12c   :  { %1826 = vst [vmem:[#allocation2 + $0x98] sm:$0xff] %v708_v31  ;;  %1827 = vst [vmem:[#allocation2 + $0xa0] sm:$0xff] %v357_v45  ;;  %v710_v59 = vpop.f32.mrb[10].mxu1  ;;  %v359_v20 = vpop.f32.mrb[11].mxu0 }
 0x12d   :  { %1829 = vst [vmem:[#allocation2 + $0xb0] sm:$0xff] %v710_v59  ;;  %1828 = vst [vmem:[#allocation2 + $0xa8] sm:$0xff] %v359_v20  ;;  %v712_v61 = vpop.f32.mrb[11].mxu1 }
 0x12e   :  { %1830 = vst [vmem:[#allocation2 + $0xb8] sm:$0xff] %v712_v61  ;;  %2538 = vmatmul.mubr.msk.bf16.gmra.mrb[116].mxu0 %vm202_vm0, %v3073_v15 }
 0x12f   :  { %2618 = vmatmul.mubr.msk.bf16.gmra.mrb[116].mxu1 %vm202_vm0, %v3073_v15  ;;  %2539 = vmatprep.mubr.msk.bf16.mxu0 %vm202_vm0, %v3113_v35 }
 0x130   :  { %2619 = vmatprep.mubr.msk.bf16.mxu1 %vm202_vm0, %v3113_v35 }
 0x131   :  { %v363_v21 = vpop.f32.mrb[12].mxu0 }
 0x132   :  { %1831 = vst [vmem:[#allocation2 + $0xc0] sm:$0xff] %v363_v21  ;;  %v716_v62 = vpop.f32.mrb[12].mxu1  ;;  %v365_v3 = vpop.f32.mrb[13].mxu0 }
 0x133   :  { %1833 = vst [vmem:[#allocation2 + $0xd0] sm:$0xff] %v716_v62  ;;  %1832 = vst [vmem:[#allocation2 + $0xc8] sm:$0xff] %v365_v3  ;;  %v718_v36 = vpop.f32.mrb[13].mxu1  ;;  %v367_v48 = vpop.f32.mrb[14].mxu0 }
 0x134   :  { %1834 = vst [vmem:[#allocation2 + $0xd8] sm:$0xff] %v718_v36  ;;  %1835 = vst [vmem:[#allocation2 + $0xe0] sm:$0xff] %v367_v48  ;;  %v720_v7 = vpop.f32.mrb[14].mxu1  ;;  %v369_v12 = vpop.f32.mrb[15].mxu0 }
 0x135   :  { %1837 = vst [vmem:[#allocation2 + $0xf0] sm:$0xff] %v720_v7  ;;  %1836 = vst [vmem:[#allocation2 + $0xe8] sm:$0xff] %v369_v12  ;;  %v722_v15 = vpop.f32.mrb[15].mxu1 }
 0x136   :  { %1838 = vst [vmem:[#allocation2 + $0xf8] sm:$0xff] %v722_v15  ;;  %2540 = vmatmul.mubr.msk.bf16.gmra.mrb[120].mxu0 %vm202_vm0, %v3113_v35 }
 0x137   :  { %2620 = vmatmul.mubr.msk.bf16.gmra.mrb[120].mxu1 %vm202_vm0, %v3113_v35  ;;  %2541 = vmatprep.mubr.msk.bf16.mxu0 %vm202_vm0, %v3153_v55 }
 0x138   :  { %2621 = vmatprep.mubr.msk.bf16.mxu1 %vm202_vm0, %v3153_v55 }
 0x139   :  { %v373_v18 = vpop.f32.mrb[16].mxu0 }
 0x13a   :  { %1839 = vst [vmem:[#allocation2 + $0x100] sm:$0xff] %v373_v18  ;;  %v726_v25 = vpop.f32.mrb[16].mxu1  ;;  %v375_v39 = vpop.f32.mrb[17].mxu0 }
 0x13b   :  { %1841 = vst [vmem:[#allocation2 + $0x110] sm:$0xff] %v726_v25  ;;  %1840 = vst [vmem:[#allocation2 + $0x108] sm:$0xff] %v375_v39  ;;  %v728_v53 = vpop.f32.mrb[17].mxu1  ;;  %v377_v4 = vpop.f32.mrb[18].mxu0 }
 0x13c   :  { %1842 = vst [vmem:[#allocation2 + $0x118] sm:$0xff] %v728_v53  ;;  %1843 = vst [vmem:[#allocation2 + $0x120] sm:$0xff] %v377_v4  ;;  %v730_v33 = vpop.f32.mrb[18].mxu1  ;;  %v379_v13 = vpop.f32.mrb[19].mxu0 }
 0x13d   :  { %1845 = vst [vmem:[#allocation2 + $0x130] sm:$0xff] %v730_v33  ;;  %1844 = vst [vmem:[#allocation2 + $0x128] sm:$0xff] %v379_v13  ;;  %v732_v35 = vpop.f32.mrb[19].mxu1 }
 0x13e   :  { %1846 = vst [vmem:[#allocation2 + $0x138] sm:$0xff] %v732_v35  ;;  %2542 = vmatmul.mubr.msk.bf16.gmra.mrb[124].mxu0 %vm202_vm0, %v3153_v55 }
 0x13f   :  { %2622 = vmatmul.mubr.msk.bf16.gmra.mrb[124].mxu1 %vm202_vm0, %v3153_v55  ;;  %2639 = vmatprep.mubr.msk.bf16.mxu0 %vm202_vm0, %v3209_v26 }
 0x140   :  { %2719 = vmatprep.mubr.msk.bf16.mxu1 %vm202_vm0, %v3209_v26 }
 0x141   :  { %v383_v23 = vpop.f32.mrb[20].mxu0 }
 0x142   :  { %1847 = vst [vmem:[#allocation2 + $0x140] sm:$0xff] %v383_v23  ;;  %v736_v32 = vpop.f32.mrb[20].mxu1  ;;  %v385_v43 = vpop.f32.mrb[21].mxu0 }
 0x143   :  { %1849 = vst [vmem:[#allocation2 + $0x150] sm:$0xff] %v736_v32  ;;  %1848 = vst [vmem:[#allocation2 + $0x148] sm:$0xff] %v385_v43  ;;  %v738_v51 = vpop.f32.mrb[21].mxu1  ;;  %v387_v63 = vpop.f32.mrb[22].mxu0 }
 0x144   :  { %1850 = vst [vmem:[#allocation2 + $0x158] sm:$0xff] %v738_v51  ;;  %1851 = vst [vmem:[#allocation2 + $0x160] sm:$0xff] %v387_v63  ;;  %v740_v49 = vpop.f32.mrb[22].mxu1  ;;  %v389_v47 = vpop.f32.mrb[23].mxu0 }
 0x145   :  { %1853 = vst [vmem:[#allocation2 + $0x170] sm:$0xff] %v740_v49  ;;  %1852 = vst [vmem:[#allocation2 + $0x168] sm:$0xff] %v389_v47  ;;  %v742_v55 = vpop.f32.mrb[23].mxu1 }
 0x146   :  { %1854 = vst [vmem:[#allocation2 + $0x178] sm:$0xff] %v742_v55  ;;  %2640 = vmatmul.mubr.msk.bf16.vlgmr.msra.gmra.mrb[128].mxu0 %vm202_vm0, %v3209_v26 }
 0x147   :  { %2720 = vmatmul.mubr.msk.bf16.vlgmr.msra.gmra.mrb[128].mxu1 %vm202_vm0, %v3209_v26  ;;  %2641 = vmatprep.mubr.msk.bf16.mxu0 %vm202_vm0, %v3257_v8 }
 0x148   :  { %2721 = vmatprep.mubr.msk.bf16.mxu1 %vm202_vm0, %v3257_v8 }
 0x149   :  { %v393_v57 = vpop.f32.mrb[24].mxu0 }
 0x14a   :  { %1855 = vst [vmem:[#allocation2 + $0x180] sm:$0xff] %v393_v57  ;;  %v746_v1 = vpop.f32.mrb[24].mxu1  ;;  %v395_v17 = vpop.f32.mrb[25].mxu0 }
 0x14b   :  { %1857 = vst [vmem:[#allocation2 + $0x190] sm:$0xff] %v746_v1  ;;  %1856 = vst [vmem:[#allocation2 + $0x188] sm:$0xff] %v395_v17  ;;  %v748_v31 = vpop.f32.mrb[25].mxu1  ;;  %v397_v45 = vpop.f32.mrb[26].mxu0 }
 0x14c   :  { %1858 = vst [vmem:[#allocation2 + $0x198] sm:$0xff] %v748_v31  ;;  %1859 = vst [vmem:[#allocation2 + $0x1a0] sm:$0xff] %v397_v45  ;;  %v750_v59 = vpop.f32.mrb[26].mxu1  ;;  %v399_v20 = vpop.f32.mrb[27].mxu0 }
 0x14d   :  { %1861 = vst [vmem:[#allocation2 + $0x1b0] sm:$0xff] %v750_v59  ;;  %1860 = vst [vmem:[#allocation2 + $0x1a8] sm:$0xff] %v399_v20  ;;  %v752_v26 = vpop.f32.mrb[27].mxu1 }
 0x14e   :  { %1862 = vst [vmem:[#allocation2 + $0x1b8] sm:$0xff] %v752_v26  ;;  %2642 = vmatmul.mubr.msk.bf16.gmra.mrb[132].mxu0 %vm202_vm0, %v3257_v8 }
 0x14f   :  { %2722 = vmatmul.mubr.msk.bf16.gmra.mrb[132].mxu1 %vm202_vm0, %v3257_v8  ;;  %2643 = vmatprep.mubr.msk.bf16.mxu0 %vm202_vm0, %v3305_v24 }
 0x150   :  { %2723 = vmatprep.mubr.msk.bf16.mxu1 %vm202_vm0, %v3305_v24 }
 0x151   :  { %v403_v61 = vpop.f32.mrb[28].mxu0 }
 0x152   :  { %1863 = vst [vmem:[#allocation2 + $0x1c0] sm:$0xff] %v403_v61  ;;  %v756_v21 = vpop.f32.mrb[28].mxu1  ;;  %v405_v62 = vpop.f32.mrb[29].mxu0 }
 0x153   :  { %1865 = vst [vmem:[#allocation2 + $0x1d0] sm:$0xff] %v756_v21  ;;  %1864 = vst [vmem:[#allocation2 + $0x1c8] sm:$0xff] %v405_v62  ;;  %v758_v3 = vpop.f32.mrb[29].mxu1  ;;  %v407_v36 = vpop.f32.mrb[30].mxu0 }
 0x154   :  { %1866 = vst [vmem:[#allocation2 + $0x1d8] sm:$0xff] %v758_v3  ;;  %1867 = vst [vmem:[#allocation2 + $0x1e0] sm:$0xff] %v407_v36  ;;  %v760_v48 = vpop.f32.mrb[30].mxu1  ;;  %v409_v7 = vpop.f32.mrb[31].mxu0 }
 0x155   :  { %1869 = vst [vmem:[#allocation2 + $0x1f0] sm:$0xff] %v760_v48  ;;  %1868 = vst [vmem:[#allocation2 + $0x1e8] sm:$0xff] %v409_v7  ;;  %v762_v8 = vpop.f32.mrb[31].mxu1 }
 0x156   :  { %1870 = vst [vmem:[#allocation2 + $0x1f8] sm:$0xff] %v762_v8  ;;  %2644 = vmatmul.mubr.msk.bf16.gmra.mrb[136].mxu0 %vm202_vm0, %v3305_v24 }
 0x157   :  { %2724 = vmatmul.mubr.msk.bf16.gmra.mrb[136].mxu1 %vm202_vm0, %v3305_v24  ;;  %2645 = vmatprep.mubr.msk.bf16.mxu0 %vm202_vm0, %v3353_v38 }
 0x158   :  { %2725 = vmatprep.mubr.msk.bf16.mxu1 %vm202_vm0, %v3353_v38 }
 0x159   :  { %v413_v12 = vpop.f32.mrb[32].mxu0 }
 0x15a   :  { %1871 = vst [vmem:[#allocation2 + $0x200] sm:$0xff] %v413_v12  ;;  %v766_v15 = vpop.f32.mrb[32].mxu1  ;;  %v415_v18 = vpop.f32.mrb[33].mxu0 }
 0x15b   :  { %1873 = vst [vmem:[#allocation2 + $0x210] sm:$0xff] %v766_v15  ;;  %1872 = vst [vmem:[#allocation2 + $0x208] sm:$0xff] %v415_v18  ;;  %v768_v25 = vpop.f32.mrb[33].mxu1  ;;  %v417_v39 = vpop.f32.mrb[34].mxu0 }
 0x15c   :  { %1874 = vst [vmem:[#allocation2 + $0x218] sm:$0xff] %v768_v25  ;;  %1875 = vst [vmem:[#allocation2 + $0x220] sm:$0xff] %v417_v39  ;;  %v770_v53 = vpop.f32.mrb[34].mxu1  ;;  %v419_v4 = vpop.f32.mrb[35].mxu0 }
 0x15d   :  { %1877 = vst [vmem:[#allocation2 + $0x230] sm:$0xff] %v770_v53  ;;  %1876 = vst [vmem:[#allocation2 + $0x228] sm:$0xff] %v419_v4  ;;  %v772_v24 = vpop.f32.mrb[35].mxu1 }
 0x15e   :  { %1878 = vst [vmem:[#allocation2 + $0x238] sm:$0xff] %v772_v24  ;;  %2646 = vmatmul.mubr.msk.bf16.gmra.mrb[140].mxu0 %vm202_vm0, %v3353_v38 }
 0x15f   :  { %2726 = vmatmul.mubr.msk.bf16.gmra.mrb[140].mxu1 %vm202_vm0, %v3353_v38  ;;  %2647 = vmatprep.mubr.msk.bf16.mxu0 %vm202_vm0, %v3401_v52 }
 0x160   :  { %2727 = vmatprep.mubr.msk.bf16.mxu1 %vm202_vm0, %v3401_v52 }
 0x161   :  { %v423_v33 = vpop.f32.mrb[36].mxu0 }
 0x162   :  { %1879 = vst [vmem:[#allocation2 + $0x240] sm:$0xff] %v423_v33  ;;  %v776_v13 = vpop.f32.mrb[36].mxu1  ;;  %v425_v35 = vpop.f32.mrb[37].mxu0 }
 0x163   :  { %1881 = vst [vmem:[#allocation2 + $0x250] sm:$0xff] %v776_v13  ;;  %1880 = vst [vmem:[#allocation2 + $0x248] sm:$0xff] %v425_v35  ;;  %v778_v23 = vpop.f32.mrb[37].mxu1  ;;  %v427_v32 = vpop.f32.mrb[38].mxu0 }
 0x164   :  { %1882 = vst [vmem:[#allocation2 + $0x258] sm:$0xff] %v778_v23  ;;  %1883 = vst [vmem:[#allocation2 + $0x260] sm:$0xff] %v427_v32  ;;  %v780_v43 = vpop.f32.mrb[38].mxu1  ;;  %v429_v51 = vpop.f32.mrb[39].mxu0 }
 0x165   :  { %1885 = vst [vmem:[#allocation2 + $0x270] sm:$0xff] %v780_v43  ;;  %1884 = vst [vmem:[#allocation2 + $0x268] sm:$0xff] %v429_v51  ;;  %v782_v38 = vpop.f32.mrb[39].mxu1 }
 0x166   :  { %1886 = vst [vmem:[#allocation2 + $0x278] sm:$0xff] %v782_v38  ;;  %2648 = vmatmul.mubr.msk.bf16.gmra.mrb[144].mxu0 %vm202_vm0, %v3401_v52 }
 0x167   :  { %2728 = vmatmul.mubr.msk.bf16.gmra.mrb[144].mxu1 %vm202_vm0, %v3401_v52  ;;  %2649 = vmatprep.mubr.msk.bf16.mxu0 %vm202_vm0, %v3441_v60 }
 0x168   :  { %2729 = vmatprep.mubr.msk.bf16.mxu1 %vm202_vm0, %v3441_v60 }
 0x169   :  { %v433_v63 = vpop.f32.mrb[40].mxu0 }
 0x16a   :  { %1887 = vst [vmem:[#allocation2 + $0x280] sm:$0xff] %v433_v63  ;;  %v786_v49 = vpop.f32.mrb[40].mxu1  ;;  %v435_v47 = vpop.f32.mrb[41].mxu0 }
 0x16b   :  { %1889 = vst [vmem:[#allocation2 + $0x290] sm:$0xff] %v786_v49  ;;  %1888 = vst [vmem:[#allocation2 + $0x288] sm:$0xff] %v435_v47  ;;  %v788_v55 = vpop.f32.mrb[41].mxu1  ;;  %v437_v57 = vpop.f32.mrb[42].mxu0 }
 0x16c   :  { %1890 = vst [vmem:[#allocation2 + $0x298] sm:$0xff] %v788_v55  ;;  %1891 = vst [vmem:[#allocation2 + $0x2a0] sm:$0xff] %v437_v57  ;;  %v790_v1 = vpop.f32.mrb[42].mxu1  ;;  %v439_v17 = vpop.f32.mrb[43].mxu0 }
 0x16d   :  { %1893 = vst [vmem:[#allocation2 + $0x2b0] sm:$0xff] %v790_v1  ;;  %1892 = vst [vmem:[#allocation2 + $0x2a8] sm:$0xff] %v439_v17  ;;  %v792_v52 = vpop.f32.mrb[43].mxu1 }
 0x16e   :  { %1894 = vst [vmem:[#allocation2 + $0x2b8] sm:$0xff] %v792_v52  ;;  %2650 = vmatmul.mubr.msk.bf16.gmra.mrb[148].mxu0 %vm202_vm0, %v3441_v60 }
 0x16f   :  { %2730 = vmatmul.mubr.msk.bf16.gmra.mrb[148].mxu1 %vm202_vm0, %v3441_v60  ;;  %2651 = vmatprep.mubr.msk.bf16.mxu0 %vm202_vm0, %v3513_v46 }
 0x170   :  { %2731 = vmatprep.mubr.msk.bf16.mxu1 %vm202_vm0, %v3513_v46 }
 0x171   :  { %v443_v31 = vpop.f32.mrb[44].mxu0 }
 0x172   :  { %1895 = vst [vmem:[#allocation2 + $0x2c0] sm:$0xff] %v443_v31  ;;  %v796_v45 = vpop.f32.mrb[44].mxu1  ;;  %v445_v59 = vpop.f32.mrb[45].mxu0 }
 0x173   :  { %1897 = vst [vmem:[#allocation2 + $0x2d0] sm:$0xff] %v796_v45  ;;  %1896 = vst [vmem:[#allocation2 + $0x2c8] sm:$0xff] %v445_v59  ;;  %v798_v20 = vpop.f32.mrb[45].mxu1  ;;  %v447_v26 = vpop.f32.mrb[46].mxu0 }
 0x174   :  { %1898 = vst [vmem:[#allocation2 + $0x2d8] sm:$0xff] %v798_v20  ;;  %1899 = vst [vmem:[#allocation2 + $0x2e0] sm:$0xff] %v447_v26  ;;  %v800_v61 = vpop.f32.mrb[46].mxu1  ;;  %v449_v21 = vpop.f32.mrb[47].mxu0 }
 0x175   :  { %1901 = vst [vmem:[#allocation2 + $0x2f0] sm:$0xff] %v800_v61  ;;  %1900 = vst [vmem:[#allocation2 + $0x2e8] sm:$0xff] %v449_v21  ;;  %v802_v60 = vpop.f32.mrb[47].mxu1 }
 0x176   :  { %1902 = vst [vmem:[#allocation2 + $0x2f8] sm:$0xff] %v802_v60  ;;  %2652 = vmatmul.mubr.msk.bf16.gmra.mrb[152].mxu0 %vm202_vm0, %v3513_v46 }
 0x177   :  { %2732 = vmatmul.mubr.msk.bf16.gmra.mrb[152].mxu1 %vm202_vm0, %v3513_v46  ;;  %2653 = vmatprep.mubr.msk.bf16.mxu0 %vm202_vm0, %v3585_v42 }
 0x178   :  { %2733 = vmatprep.mubr.msk.bf16.mxu1 %vm202_vm0, %v3585_v42 }
 0x179   :  { %v453_v62 = vpop.f32.mrb[48].mxu0 }
 0x17a   :  { %1903 = vst [vmem:[#allocation2 + $0x300] sm:$0xff] %v453_v62  ;;  %v806_v3 = vpop.f32.mrb[48].mxu1  ;;  %v455_v36 = vpop.f32.mrb[49].mxu0 }
 0x17b   :  { %1905 = vst [vmem:[#allocation2 + $0x310] sm:$0xff] %v806_v3  ;;  %1904 = vst [vmem:[#allocation2 + $0x308] sm:$0xff] %v455_v36  ;;  %v808_v48 = vpop.f32.mrb[49].mxu1  ;;  %v457_v7 = vpop.f32.mrb[50].mxu0 }
 0x17c   :  { %1906 = vst [vmem:[#allocation2 + $0x318] sm:$0xff] %v808_v48  ;;  %1907 = vst [vmem:[#allocation2 + $0x320] sm:$0xff] %v457_v7  ;;  %v810_v8 = vpop.f32.mrb[50].mxu1  ;;  %v459_v12 = vpop.f32.mrb[51].mxu0 }
 0x17d   :  { %1909 = vst [vmem:[#allocation2 + $0x330] sm:$0xff] %v810_v8  ;;  %1908 = vst [vmem:[#allocation2 + $0x328] sm:$0xff] %v459_v12  ;;  %v812_v46 = vpop.f32.mrb[51].mxu1 }
 0x17e   :  { %1910 = vst [vmem:[#allocation2 + $0x338] sm:$0xff] %v812_v46  ;;  %2654 = vmatmul.mubr.msk.bf16.gmra.mrb[156].mxu0 %vm202_vm0, %v3585_v42 }
 0x17f   :  { %2734 = vmatmul.mubr.msk.bf16.gmra.mrb[156].mxu1 %vm202_vm0, %v3585_v42  ;;  %2655 = vmatprep.mubr.msk.bf16.mxu0 %vm202_vm0, %v3189_v10 }
 0x180   :  { %2735 = vmatprep.mubr.msk.bf16.mxu1 %vm202_vm0, %v3189_v10 }
 0x181   :  { %v463_v15 = vpop.f32.mrb[52].mxu0 }
 0x182   :  { %1911 = vst [vmem:[#allocation2 + $0x340] sm:$0xff] %v463_v15  ;;  %v816_v18 = vpop.f32.mrb[52].mxu1  ;;  %v465_v25 = vpop.f32.mrb[53].mxu0 }
 0x183   :  { %1913 = vst [vmem:[#allocation2 + $0x350] sm:$0xff] %v816_v18  ;;  %1912 = vst [vmem:[#allocation2 + $0x348] sm:$0xff] %v465_v25  ;;  %v818_v39 = vpop.f32.mrb[53].mxu1  ;;  %v467_v53 = vpop.f32.mrb[54].mxu0 }
 0x184   :  { %1914 = vst [vmem:[#allocation2 + $0x358] sm:$0xff] %v818_v39  ;;  %1915 = vst [vmem:[#allocation2 + $0x360] sm:$0xff] %v467_v53  ;;  %v820_v4 = vpop.f32.mrb[54].mxu1  ;;  %v469_v24 = vpop.f32.mrb[55].mxu0 }
 0x185   :  { %1917 = vst [vmem:[#allocation2 + $0x370] sm:$0xff] %v820_v4  ;;  %1916 = vst [vmem:[#allocation2 + $0x368] sm:$0xff] %v469_v24  ;;  %v822_v42 = vpop.f32.mrb[55].mxu1 }
 0x186   :  { %1918 = vst [vmem:[#allocation2 + $0x378] sm:$0xff] %v822_v42  ;;  %2656 = vmatmul.mubr.msk.bf16.gmra.mrb[160].mxu0 %vm202_vm0, %v3189_v10 }
 0x187   :  { %2736 = vmatmul.mubr.msk.bf16.gmra.mrb[160].mxu1 %vm202_vm0, %v3189_v10  ;;  %2657 = vmatprep.mubr.msk.bf16.mxu0 %vm202_vm0, %v3231_v40 }
 0x188   :  { %2737 = vmatprep.mubr.msk.bf16.mxu1 %vm202_vm0, %v3231_v40 }
 0x189   :  { %v473_v33 = vpop.f32.mrb[56].mxu0 }
 0x18a   :  { %1919 = vst [vmem:[#allocation2 + $0x380] sm:$0xff] %v473_v33  ;;  %v826_v13 = vpop.f32.mrb[56].mxu1  ;;  %v475_v35 = vpop.f32.mrb[57].mxu0 }
 0x18b   :  { %1921 = vst [vmem:[#allocation2 + $0x390] sm:$0xff] %v826_v13  ;;  %1920 = vst [vmem:[#allocation2 + $0x388] sm:$0xff] %v475_v35  ;;  %v828_v23 = vpop.f32.mrb[57].mxu1  ;;  %v477_v32 = vpop.f32.mrb[58].mxu0 }
 0x18c   :  { %1922 = vst [vmem:[#allocation2 + $0x398] sm:$0xff] %v828_v23  ;;  %1923 = vst [vmem:[#allocation2 + $0x3a0] sm:$0xff] %v477_v32  ;;  %v830_v43 = vpop.f32.mrb[58].mxu1  ;;  %v479_v51 = vpop.f32.mrb[59].mxu0 }
 0x18d   :  { %1925 = vst [vmem:[#allocation2 + $0x3b0] sm:$0xff] %v830_v43  ;;  %1924 = vst [vmem:[#allocation2 + $0x3a8] sm:$0xff] %v479_v51  ;;  %v832_v10 = vpop.f32.mrb[59].mxu1 }
 0x18e   :  { %1926 = vst [vmem:[#allocation2 + $0x3b8] sm:$0xff] %v832_v10  ;;  %2658 = vmatmul.mubr.msk.bf16.gmra.mrb[164].mxu0 %vm202_vm0, %v3231_v40 }
 0x18f   :  { %2738 = vmatmul.mubr.msk.bf16.gmra.mrb[164].mxu1 %vm202_vm0, %v3231_v40  ;;  %2659 = vmatprep.mubr.msk.bf16.mxu0 %vm202_vm0, %v3277_v0 }
 0x190   :  { %2739 = vmatprep.mubr.msk.bf16.mxu1 %vm202_vm0, %v3277_v0 }
 0x191   :  { %v483_v38 = vpop.f32.mrb[60].mxu0 }
 0x192   :  { %1927 = vst [vmem:[#allocation2 + $0x3c0] sm:$0xff] %v483_v38  ;;  %v836_v63 = vpop.f32.mrb[60].mxu1  ;;  %v485_v49 = vpop.f32.mrb[61].mxu0 }
 0x193   :  { %1929 = vst [vmem:[#allocation2 + $0x3d0] sm:$0xff] %v836_v63  ;;  %1928 = vst [vmem:[#allocation2 + $0x3c8] sm:$0xff] %v485_v49  ;;  %v838_v47 = vpop.f32.mrb[61].mxu1  ;;  %v487_v55 = vpop.f32.mrb[62].mxu0 }
 0x194   :  { %1930 = vst [vmem:[#allocation2 + $0x3d8] sm:$0xff] %v838_v47  ;;  %1931 = vst [vmem:[#allocation2 + $0x3e0] sm:$0xff] %v487_v55  ;;  %v840_v57 = vpop.f32.mrb[62].mxu1  ;;  %v489_v1 = vpop.f32.mrb[63].mxu0 }
 0x195   :  { %1933 = vst [vmem:[#allocation2 + $0x3f0] sm:$0xff] %v840_v57  ;;  %1932 = vst [vmem:[#allocation2 + $0x3e8] sm:$0xff] %v489_v1  ;;  %v842_v40 = vpop.f32.mrb[63].mxu1 }
 0x196   :  { %1934 = vst [vmem:[#allocation2 + $0x3f8] sm:$0xff] %v842_v40  ;;  %2660 = vmatmul.mubr.msk.bf16.gmra.mrb[168].mxu0 %vm202_vm0, %v3277_v0 }
 0x197   :  { %2740 = vmatmul.mubr.msk.bf16.gmra.mrb[168].mxu1 %vm202_vm0, %v3277_v0  ;;  %2661 = vmatprep.mubr.msk.bf16.mxu0 %vm202_vm0, %v3325_v34 }
 0x198   :  { %2741 = vmatprep.mubr.msk.bf16.mxu1 %vm202_vm0, %v3325_v34 }
 0x199   :  { %v493_v17 = vpop.f32.mrb[64].mxu0 }
 0x19a   :  { %1935 = vst [vmem:[#allocation2 + $0x400] sm:$0xff] %v493_v17  ;;  %v846_v52 = vpop.f32.mrb[64].mxu1  ;;  %v495_v31 = vpop.f32.mrb[65].mxu0 }
 0x19b   :  { %1937 = vst [vmem:[#allocation2 + $0x410] sm:$0xff] %v846_v52  ;;  %1936 = vst [vmem:[#allocation2 + $0x408] sm:$0xff] %v495_v31  ;;  %v848_v45 = vpop.f32.mrb[65].mxu1  ;;  %v497_v59 = vpop.f32.mrb[66].mxu0 }
 0x19c   :  { %1938 = vst [vmem:[#allocation2 + $0x418] sm:$0xff] %v848_v45  ;;  %1939 = vst [vmem:[#allocation2 + $0x420] sm:$0xff] %v497_v59  ;;  %v850_v20 = vpop.f32.mrb[66].mxu1  ;;  %v499_v26 = vpop.f32.mrb[67].mxu0 }
 0x19d   :  { %1941 = vst [vmem:[#allocation2 + $0x430] sm:$0xff] %v850_v20  ;;  %1940 = vst [vmem:[#allocation2 + $0x428] sm:$0xff] %v499_v26  ;;  %v852_v0 = vpop.f32.mrb[67].mxu1 }
 0x19e   :  { %1942 = vst [vmem:[#allocation2 + $0x438] sm:$0xff] %v852_v0  ;;  %2662 = vmatmul.mubr.msk.bf16.gmra.mrb[172].mxu0 %vm202_vm0, %v3325_v34 }
 0x19f   :  { %2742 = vmatmul.mubr.msk.bf16.gmra.mrb[172].mxu1 %vm202_vm0, %v3325_v34  ;;  %2663 = vmatprep.mubr.msk.bf16.mxu0 %vm202_vm0, %v3373_v6 }
 0x1a0   :  { %2743 = vmatprep.mubr.msk.bf16.mxu1 %vm202_vm0, %v3373_v6 }
 0x1a1   :  { %v503_v61 = vpop.f32.mrb[68].mxu0 }
 0x1a2   :  { %1943 = vst [vmem:[#allocation2 + $0x440] sm:$0xff] %v503_v61  ;;  %v856_v21 = vpop.f32.mrb[68].mxu1  ;;  %v505_v60 = vpop.f32.mrb[69].mxu0 }
 0x1a3   :  { %1945 = vst [vmem:[#allocation2 + $0x450] sm:$0xff] %v856_v21  ;;  %1944 = vst [vmem:[#allocation2 + $0x448] sm:$0xff] %v505_v60  ;;  %v858_v62 = vpop.f32.mrb[69].mxu1  ;;  %v507_v3 = vpop.f32.mrb[70].mxu0 }
 0x1a4   :  { %1946 = vst [vmem:[#allocation2 + $0x458] sm:$0xff] %v858_v62  ;;  %1947 = vst [vmem:[#allocation2 + $0x460] sm:$0xff] %v507_v3  ;;  %v860_v36 = vpop.f32.mrb[70].mxu1  ;;  %v509_v48 = vpop.f32.mrb[71].mxu0 }
 0x1a5   :  { %1949 = vst [vmem:[#allocation2 + $0x470] sm:$0xff] %v860_v36  ;;  %1948 = vst [vmem:[#allocation2 + $0x468] sm:$0xff] %v509_v48  ;;  %v862_v34 = vpop.f32.mrb[71].mxu1 }
 0x1a6   :  { %1950 = vst [vmem:[#allocation2 + $0x478] sm:$0xff] %v862_v34  ;;  %2664 = vmatmul.mubr.msk.bf16.gmra.mrb[176].mxu0 %vm202_vm0, %v3373_v6 }
 0x1a7   :  { %2744 = vmatmul.mubr.msk.bf16.gmra.mrb[176].mxu1 %vm202_vm0, %v3373_v6  ;;  %2665 = vmatprep.mubr.msk.bf16.mxu0 %vm202_vm0, %v3428_v2 }
 0x1a8   :  { %2745 = vmatprep.mubr.msk.bf16.mxu1 %vm202_vm0, %v3428_v2 }
 0x1a9   :  { %v513_v7 = vpop.f32.mrb[72].mxu0 }
 0x1aa   :  { %1951 = vst [vmem:[#allocation2 + $0x480] sm:$0xff] %v513_v7  ;;  %v866_v8 = vpop.f32.mrb[72].mxu1  ;;  %v515_v12 = vpop.f32.mrb[73].mxu0 }
 0x1ab   :  { %1953 = vst [vmem:[#allocation2 + $0x490] sm:$0xff] %v866_v8  ;;  %1952 = vst [vmem:[#allocation2 + $0x488] sm:$0xff] %v515_v12  ;;  %v868_v46 = vpop.f32.mrb[73].mxu1  ;;  %v517_v15 = vpop.f32.mrb[74].mxu0 }
 0x1ac   :  { %1954 = vst [vmem:[#allocation2 + $0x498] sm:$0xff] %v868_v46  ;;  %1955 = vst [vmem:[#allocation2 + $0x4a0] sm:$0xff] %v517_v15  ;;  %v870_v18 = vpop.f32.mrb[74].mxu1  ;;  %v519_v25 = vpop.f32.mrb[75].mxu0 }
 0x1ad   :  { %1957 = vst [vmem:[#allocation2 + $0x4b0] sm:$0xff] %v870_v18  ;;  %1956 = vst [vmem:[#allocation2 + $0x4a8] sm:$0xff] %v519_v25  ;;  %v872_v6 = vpop.f32.mrb[75].mxu1 }
 0x1ae   :  { %1958 = vst [vmem:[#allocation2 + $0x4b8] sm:$0xff] %v872_v6  ;;  %2666 = vmatmul.mubr.msk.bf16.gmra.mrb[180].mxu0 %vm202_vm0, %v3428_v2 }
 0x1af   :  { %2746 = vmatmul.mubr.msk.bf16.gmra.mrb[180].mxu1 %vm202_vm0, %v3428_v2  ;;  %2667 = vmatprep.mubr.msk.bf16.mxu0 %vm202_vm0, %v3500_v28 }
 0x1b0   :  { %2747 = vmatprep.mubr.msk.bf16.mxu1 %vm202_vm0, %v3500_v28 }
 0x1b1   :  { %v523_v39 = vpop.f32.mrb[76].mxu0 }
 0x1b2   :  { %1959 = vst [vmem:[#allocation2 + $0x4c0] sm:$0xff] %v523_v39  ;;  %v876_v53 = vpop.f32.mrb[76].mxu1  ;;  %v525_v4 = vpop.f32.mrb[77].mxu0 }
 0x1b3   :  { %1961 = vst [vmem:[#allocation2 + $0x4d0] sm:$0xff] %v876_v53  ;;  %1960 = vst [vmem:[#allocation2 + $0x4c8] sm:$0xff] %v525_v4  ;;  %v878_v24 = vpop.f32.mrb[77].mxu1  ;;  %v527_v42 = vpop.f32.mrb[78].mxu0 }
 0x1b4   :  { %1962 = vst [vmem:[#allocation2 + $0x4d8] sm:$0xff] %v878_v24  ;;  %1963 = vst [vmem:[#allocation2 + $0x4e0] sm:$0xff] %v527_v42  ;;  %v880_v33 = vpop.f32.mrb[78].mxu1  ;;  %v529_v13 = vpop.f32.mrb[79].mxu0 }
 0x1b5   :  { %1965 = vst [vmem:[#allocation2 + $0x4f0] sm:$0xff] %v880_v33  ;;  %1964 = vst [vmem:[#allocation2 + $0x4e8] sm:$0xff] %v529_v13  ;;  %v882_v2 = vpop.f32.mrb[79].mxu1 }
 0x1b6   :  { %1966 = vst [vmem:[#allocation2 + $0x4f8] sm:$0xff] %v882_v2  ;;  %2668 = vmatmul.mubr.msk.bf16.gmra.mrb[184].mxu0 %vm202_vm0, %v3500_v28 }
 0x1b7   :  { %2748 = vmatmul.mubr.msk.bf16.gmra.mrb[184].mxu1 %vm202_vm0, %v3500_v28  ;;  %2669 = vmatprep.mubr.msk.bf16.mxu0 %vm202_vm0, %v3572_v9 }
 0x1b8   :  { %2749 = vmatprep.mubr.msk.bf16.mxu1 %vm202_vm0, %v3572_v9 }
 0x1b9   :  { %v533_v35 = vpop.f32.mrb[80].mxu0 }
 0x1ba   :  { %1967 = vst [vmem:[#allocation2 + $0x500] sm:$0xff] %v533_v35  ;;  %v886_v23 = vpop.f32.mrb[80].mxu1  ;;  %v535_v32 = vpop.f32.mrb[81].mxu0 }
 0x1bb   :  { %1969 = vst [vmem:[#allocation2 + $0x510] sm:$0xff] %v886_v23  ;;  %1968 = vst [vmem:[#allocation2 + $0x508] sm:$0xff] %v535_v32  ;;  %v888_v43 = vpop.f32.mrb[81].mxu1  ;;  %v537_v51 = vpop.f32.mrb[82].mxu0 }
 0x1bc   :  { %1970 = vst [vmem:[#allocation2 + $0x518] sm:$0xff] %v888_v43  ;;  %1971 = vst [vmem:[#allocation2 + $0x520] sm:$0xff] %v537_v51  ;;  %v890_v10 = vpop.f32.mrb[82].mxu1  ;;  %v539_v38 = vpop.f32.mrb[83].mxu0 }
 0x1bd   :  { %1973 = vst [vmem:[#allocation2 + $0x530] sm:$0xff] %v890_v10  ;;  %1972 = vst [vmem:[#allocation2 + $0x528] sm:$0xff] %v539_v38  ;;  %v892_v28 = vpop.f32.mrb[83].mxu1 }
 0x1be   :  { %1974 = vst [vmem:[#allocation2 + $0x538] sm:$0xff] %v892_v28  ;;  %2670 = vmatmul.mubr.msk.bf16.gmra.mrb[188].mxu0 %vm202_vm0, %v3572_v9 }
 0x1bf   :  { %2750 = vmatmul.mubr.msk.bf16.gmra.mrb[188].mxu1 %vm202_vm0, %v3572_v9  ;;  %2671 = vmatprep.mubr.msk.bf16.mxu0 %vm202_vm0, %v3213_v27 }
 0x1c0   :  { %2751 = vmatprep.mubr.msk.bf16.mxu1 %vm202_vm0, %v3213_v27 }
 0x1c1   :  { %v543_v63 = vpop.f32.mrb[84].mxu0 }
 0x1c2   :  { %1975 = vst [vmem:[#allocation2 + $0x540] sm:$0xff] %v543_v63  ;;  %v896_v49 = vpop.f32.mrb[84].mxu1  ;;  %v545_v47 = vpop.f32.mrb[85].mxu0 }
 0x1c3   :  { %1977 = vst [vmem:[#allocation2 + $0x550] sm:$0xff] %v896_v49  ;;  %1976 = vst [vmem:[#allocation2 + $0x548] sm:$0xff] %v545_v47  ;;  %v898_v55 = vpop.f32.mrb[85].mxu1  ;;  %v547_v57 = vpop.f32.mrb[86].mxu0 }
 0x1c4   :  { %1978 = vst [vmem:[#allocation2 + $0x558] sm:$0xff] %v898_v55  ;;  %1979 = vst [vmem:[#allocation2 + $0x560] sm:$0xff] %v547_v57  ;;  %v900_v1 = vpop.f32.mrb[86].mxu1  ;;  %v549_v40 = vpop.f32.mrb[87].mxu0 }
 0x1c5   :  { %1981 = vst [vmem:[#allocation2 + $0x570] sm:$0xff] %v900_v1  ;;  %1980 = vst [vmem:[#allocation2 + $0x568] sm:$0xff] %v549_v40  ;;  %v902_v9 = vpop.f32.mrb[87].mxu1 }
 0x1c6   :  { %1982 = vst [vmem:[#allocation2 + $0x578] sm:$0xff] %v902_v9  ;;  %2672 = vmatmul.mubr.msk.bf16.gmra.mrb[192].mxu0 %vm202_vm0, %v3213_v27 }
 0x1c7   :  { %2752 = vmatmul.mubr.msk.bf16.gmra.mrb[192].mxu1 %vm202_vm0, %v3213_v27  ;;  %2673 = vmatprep.mubr.msk.bf16.mxu0 %vm202_vm0, %v3261_v50 }
 0x1c8   :  { %2753 = vmatprep.mubr.msk.bf16.mxu1 %vm202_vm0, %v3261_v50 }
 0x1c9   :  { %v553_v17 = vpop.f32.mrb[88].mxu0 }
 0x1ca   :  { %1983 = vst [vmem:[#allocation2 + $0x580] sm:$0xff] %v553_v17  ;;  %v906_v52 = vpop.f32.mrb[88].mxu1  ;;  %v555_v31 = vpop.f32.mrb[89].mxu0 }
 0x1cb   :  { %1985 = vst [vmem:[#allocation2 + $0x590] sm:$0xff] %v906_v52  ;;  %1984 = vst [vmem:[#allocation2 + $0x588] sm:$0xff] %v555_v31  ;;  %v908_v45 = vpop.f32.mrb[89].mxu1  ;;  %v557_v59 = vpop.f32.mrb[90].mxu0 }
 0x1cc   :  { %1986 = vst [vmem:[#allocation2 + $0x598] sm:$0xff] %v908_v45  ;;  %1987 = vst [vmem:[#allocation2 + $0x5a0] sm:$0xff] %v557_v59  ;;  %v910_v20 = vpop.f32.mrb[90].mxu1  ;;  %v559_v26 = vpop.f32.mrb[91].mxu0 }
 0x1cd   :  { %1989 = vst [vmem:[#allocation2 + $0x5b0] sm:$0xff] %v910_v20  ;;  %1988 = vst [vmem:[#allocation2 + $0x5a8] sm:$0xff] %v559_v26  ;;  %v912_v27 = vpop.f32.mrb[91].mxu1 }
 0x1ce   :  { %1990 = vst [vmem:[#allocation2 + $0x5b8] sm:$0xff] %v912_v27  ;;  %2674 = vmatmul.mubr.msk.bf16.gmra.mrb[196].mxu0 %vm202_vm0, %v3261_v50 }
 0x1cf   :  { %2754 = vmatmul.mubr.msk.bf16.gmra.mrb[196].mxu1 %vm202_vm0, %v3261_v50  ;;  %2675 = vmatprep.mubr.msk.bf16.mxu0 %vm202_vm0, %v3309_v19 }
 0x1d0   :  { %2755 = vmatprep.mubr.msk.bf16.mxu1 %vm202_vm0, %v3309_v19 }
 0x1d1   :  { %v563_v0 = vpop.f32.mrb[92].mxu0 }
 0x1d2   :  { %1991 = vst [vmem:[#allocation2 + $0x5c0] sm:$0xff] %v563_v0  ;;  %v916_v61 = vpop.f32.mrb[92].mxu1  ;;  %v565_v21 = vpop.f32.mrb[93].mxu0 }
 0x1d3   :  { %1993 = vst [vmem:[#allocation2 + $0x5d0] sm:$0xff] %v916_v61  ;;  %1992 = vst [vmem:[#allocation2 + $0x5c8] sm:$0xff] %v565_v21  ;;  %v918_v60 = vpop.f32.mrb[93].mxu1  ;;  %v567_v62 = vpop.f32.mrb[94].mxu0 }
 0x1d4   :  { %1994 = vst [vmem:[#allocation2 + $0x5d8] sm:$0xff] %v918_v60  ;;  %1995 = vst [vmem:[#allocation2 + $0x5e0] sm:$0xff] %v567_v62  ;;  %v920_v3 = vpop.f32.mrb[94].mxu1  ;;  %v569_v36 = vpop.f32.mrb[95].mxu0 }
 0x1d5   :  { %1997 = vst [vmem:[#allocation2 + $0x5f0] sm:$0xff] %v920_v3  ;;  %1996 = vst [vmem:[#allocation2 + $0x5e8] sm:$0xff] %v569_v36  ;;  %v922_v50 = vpop.f32.mrb[95].mxu1 }
 0x1d6   :  { %1998 = vst [vmem:[#allocation2 + $0x5f8] sm:$0xff] %v922_v50  ;;  %2676 = vmatmul.mubr.msk.bf16.gmra.mrb[200].mxu0 %vm202_vm0, %v3309_v19 }
 0x1d7   :  { %2756 = vmatmul.mubr.msk.bf16.gmra.mrb[200].mxu1 %vm202_vm0, %v3309_v19  ;;  %2677 = vmatprep.mubr.msk.bf16.mxu0 %vm202_vm0, %v3357_v54 }
 0x1d8   :  { %2757 = vmatprep.mubr.msk.bf16.mxu1 %vm202_vm0, %v3357_v54 }
 0x1d9   :  { %v573_v48 = vpop.f32.mrb[96].mxu0 }
 0x1da   :  { %1999 = vst [vmem:[#allocation2 + $0x600] sm:$0xff] %v573_v48  ;;  %v926_v34 = vpop.f32.mrb[96].mxu1  ;;  %v575_v7 = vpop.f32.mrb[97].mxu0 }
 0x1db   :  { %2001 = vst [vmem:[#allocation2 + $0x610] sm:$0xff] %v926_v34  ;;  %2000 = vst [vmem:[#allocation2 + $0x608] sm:$0xff] %v575_v7  ;;  %v928_v8 = vpop.f32.mrb[97].mxu1  ;;  %v577_v12 = vpop.f32.mrb[98].mxu0 }
 0x1dc   :  { %2002 = vst [vmem:[#allocation2 + $0x618] sm:$0xff] %v928_v8  ;;  %2003 = vst [vmem:[#allocation2 + $0x620] sm:$0xff] %v577_v12  ;;  %v930_v46 = vpop.f32.mrb[98].mxu1  ;;  %v579_v15 = vpop.f32.mrb[99].mxu0 }
 0x1dd   :  { %2005 = vst [vmem:[#allocation2 + $0x630] sm:$0xff] %v930_v46  ;;  %2004 = vst [vmem:[#allocation2 + $0x628] sm:$0xff] %v579_v15  ;;  %v932_v19 = vpop.f32.mrb[99].mxu1 }
 0x1de   :  { %2006 = vst [vmem:[#allocation2 + $0x638] sm:$0xff] %v932_v19  ;;  %2678 = vmatmul.mubr.msk.bf16.gmra.mrb[204].mxu0 %vm202_vm0, %v3357_v54 }
 0x1df   :  { %2758 = vmatmul.mubr.msk.bf16.gmra.mrb[204].mxu1 %vm202_vm0, %v3357_v54  ;;  %2679 = vmatprep.mubr.msk.bf16.mxu0 %vm202_vm0, %v3405_v29 }
 0x1e0   :  { %2759 = vmatprep.mubr.msk.bf16.mxu1 %vm202_vm0, %v3405_v29 }
 0x1e1   :  { %v583_v18 = vpop.f32.mrb[100].mxu0 }
 0x1e2   :  { %2007 = vst [vmem:[#allocation2 + $0x640] sm:$0xff] %v583_v18  ;;  %v936_v25 = vpop.f32.mrb[100].mxu1  ;;  %v585_v6 = vpop.f32.mrb[101].mxu0 }
 0x1e3   :  { %2009 = vst [vmem:[#allocation2 + $0x650] sm:$0xff] %v936_v25  ;;  %2008 = vst [vmem:[#allocation2 + $0x648] sm:$0xff] %v585_v6  ;;  %v938_v39 = vpop.f32.mrb[101].mxu1  ;;  %v587_v53 = vpop.f32.mrb[102].mxu0 }
 0x1e4   :  { %2010 = vst [vmem:[#allocation2 + $0x658] sm:$0xff] %v938_v39  ;;  %2011 = vst [vmem:[#allocation2 + $0x660] sm:$0xff] %v587_v53  ;;  %v940_v4 = vpop.f32.mrb[102].mxu1  ;;  %v589_v24 = vpop.f32.mrb[103].mxu0 }
 0x1e5   :  { %2013 = vst [vmem:[#allocation2 + $0x670] sm:$0xff] %v940_v4  ;;  %2012 = vst [vmem:[#allocation2 + $0x668] sm:$0xff] %v589_v24  ;;  %v942_v54 = vpop.f32.mrb[103].mxu1 }
 0x1e6   :  { %2014 = vst [vmem:[#allocation2 + $0x678] sm:$0xff] %v942_v54  ;;  %2680 = vmatmul.mubr.msk.bf16.gmra.mrb[208].mxu0 %vm202_vm0, %v3405_v29 }
 0x1e7   :  { %2760 = vmatmul.mubr.msk.bf16.gmra.mrb[208].mxu1 %vm202_vm0, %v3405_v29  ;;  %2681 = vmatprep.mubr.msk.bf16.mxu0 %vm202_vm0, %v3451_v16 }
 0x1e8   :  { %2761 = vmatprep.mubr.msk.bf16.mxu1 %vm202_vm0, %v3451_v16 }
 0x1e9   :  { %v593_v42 = vpop.f32.mrb[104].mxu0 }
 0x1ea   :  { %2015 = vst [vmem:[#allocation2 + $0x680] sm:$0xff] %v593_v42  ;;  %v946_v33 = vpop.f32.mrb[104].mxu1  ;;  %v595_v13 = vpop.f32.mrb[105].mxu0 }
 0x1eb   :  { %2017 = vst [vmem:[#allocation2 + $0x690] sm:$0xff] %v946_v33  ;;  %2016 = vst [vmem:[#allocation2 + $0x688] sm:$0xff] %v595_v13  ;;  %v948_v2 = vpop.f32.mrb[105].mxu1  ;;  %v597_v35 = vpop.f32.mrb[106].mxu0 }
 0x1ec   :  { %2018 = vst [vmem:[#allocation2 + $0x698] sm:$0xff] %v948_v2  ;;  %2019 = vst [vmem:[#allocation2 + $0x6a0] sm:$0xff] %v597_v35  ;;  %v950_v23 = vpop.f32.mrb[106].mxu1  ;;  %v599_v32 = vpop.f32.mrb[107].mxu0 }
 0x1ed   :  { %2021 = vst [vmem:[#allocation2 + $0x6b0] sm:$0xff] %v950_v23  ;;  %2020 = vst [vmem:[#allocation2 + $0x6a8] sm:$0xff] %v599_v32  ;;  %v952_v29 = vpop.f32.mrb[107].mxu1 }
 0x1ee   :  { %2022 = vst [vmem:[#allocation2 + $0x6b8] sm:$0xff] %v952_v29  ;;  %2682 = vmatmul.mubr.msk.bf16.gmra.mrb[212].mxu0 %vm202_vm0, %v3451_v16 }
 0x1ef   :  { %2762 = vmatmul.mubr.msk.bf16.gmra.mrb[212].mxu1 %vm202_vm0, %v3451_v16  ;;  %2683 = vmatprep.mubr.msk.bf16.mxu0 %vm202_vm0, %v3523_v56 }
 0x1f0   :  { %2763 = vmatprep.mubr.msk.bf16.mxu1 %vm202_vm0, %v3523_v56 }
 0x1f1   :  { %v603_v43 = vpop.f32.mrb[108].mxu0 }
 0x1f2   :  { %2023 = vst [vmem:[#allocation2 + $0x6c0] sm:$0xff] %v603_v43  ;;  %v956_v51 = vpop.f32.mrb[108].mxu1  ;;  %v605_v10 = vpop.f32.mrb[109].mxu0 }
 0x1f3   :  { %2025 = vst [vmem:[#allocation2 + $0x6d0] sm:$0xff] %v956_v51  ;;  %2024 = vst [vmem:[#allocation2 + $0x6c8] sm:$0xff] %v605_v10  ;;  %v958_v38 = vpop.f32.mrb[109].mxu1  ;;  %v607_v28 = vpop.f32.mrb[110].mxu0 }
 0x1f4   :  { %2026 = vst [vmem:[#allocation2 + $0x6d8] sm:$0xff] %v958_v38  ;;  %2027 = vst [vmem:[#allocation2 + $0x6e0] sm:$0xff] %v607_v28  ;;  %v960_v63 = vpop.f32.mrb[110].mxu1  ;;  %v609_v49 = vpop.f32.mrb[111].mxu0 }
 0x1f5   :  { %2029 = vst [vmem:[#allocation2 + $0x6f0] sm:$0xff] %v960_v63  ;;  %2028 = vst [vmem:[#allocation2 + $0x6e8] sm:$0xff] %v609_v49  ;;  %v962_v16 = vpop.f32.mrb[111].mxu1 }
 0x1f6   :  { %2030 = vst [vmem:[#allocation2 + $0x6f8] sm:$0xff] %v962_v16  ;;  %2684 = vmatmul.mubr.msk.bf16.gmra.mrb[216].mxu0 %vm202_vm0, %v3523_v56 }
 0x1f7   :  { %2764 = vmatmul.mubr.msk.bf16.gmra.mrb[216].mxu1 %vm202_vm0, %v3523_v56  ;;  %2685 = vmatprep.mubr.msk.bf16.mxu0 %vm202_vm0, %v3595_v30 }
 0x1f8   :  { %2765 = vmatprep.mubr.msk.bf16.mxu1 %vm202_vm0, %v3595_v30 }
 0x1f9   :  { %v613_v47 = vpop.f32.mrb[112].mxu0 }
 0x1fa   :  { %2031 = vst [vmem:[#allocation2 + $0x700] sm:$0xff] %v613_v47  ;;  %v966_v55 = vpop.f32.mrb[112].mxu1  ;;  %v615_v57 = vpop.f32.mrb[113].mxu0 }
 0x1fb   :  { %2033 = vst [vmem:[#allocation2 + $0x710] sm:$0xff] %v966_v55  ;;  %2032 = vst [vmem:[#allocation2 + $0x708] sm:$0xff] %v615_v57  ;;  %v968_v1 = vpop.f32.mrb[113].mxu1  ;;  %v617_v40 = vpop.f32.mrb[114].mxu0 }
 0x1fc   :  { %2034 = vst [vmem:[#allocation2 + $0x718] sm:$0xff] %v968_v1  ;;  %2035 = vst [vmem:[#allocation2 + $0x720] sm:$0xff] %v617_v40  ;;  %v970_v9 = vpop.f32.mrb[114].mxu1  ;;  %v619_v17 = vpop.f32.mrb[115].mxu0 }
 0x1fd   :  { %2037 = vst [vmem:[#allocation2 + $0x730] sm:$0xff] %v970_v9  ;;  %2036 = vst [vmem:[#allocation2 + $0x728] sm:$0xff] %v619_v17  ;;  %v972_v56 = vpop.f32.mrb[115].mxu1 }
 0x1fe   :  { %2038 = vst [vmem:[#allocation2 + $0x738] sm:$0xff] %v972_v56  ;;  %2686 = vmatmul.mubr.msk.bf16.gmra.mrb[220].mxu0 %vm202_vm0, %v3595_v30 }
 0x1ff   :  { %2766 = vmatmul.mubr.msk.bf16.gmra.mrb[220].mxu1 %vm202_vm0, %v3595_v30  ;;  %2687 = vmatprep.mubr.msk.bf16.mxu0 %vm202_vm0, %v3193_v14 }
 0x200   :  { %2767 = vmatprep.mubr.msk.bf16.mxu1 %vm202_vm0, %v3193_v14 }
 0x201   :  { %v623_v52 = vpop.f32.mrb[116].mxu0 }
 0x202   :  { %2039 = vst [vmem:[#allocation2 + $0x740] sm:$0xff] %v623_v52  ;;  %v976_v31 = vpop.f32.mrb[116].mxu1  ;;  %v625_v45 = vpop.f32.mrb[117].mxu0 }
 0x203   :  { %2041 = vst [vmem:[#allocation2 + $0x750] sm:$0xff] %v976_v31  ;;  %2040 = vst [vmem:[#allocation2 + $0x748] sm:$0xff] %v625_v45  ;;  %v978_v59 = vpop.f32.mrb[117].mxu1  ;;  %v627_v20 = vpop.f32.mrb[118].mxu0 }
 0x204   :  { %2042 = vst [vmem:[#allocation2 + $0x758] sm:$0xff] %v978_v59  ;;  %2043 = vst [vmem:[#allocation2 + $0x760] sm:$0xff] %v627_v20  ;;  %v980_v26 = vpop.f32.mrb[118].mxu1  ;;  %v629_v27 = vpop.f32.mrb[119].mxu0 }
 0x205   :  { %2045 = vst [vmem:[#allocation2 + $0x770] sm:$0xff] %v980_v26  ;;  %2044 = vst [vmem:[#allocation2 + $0x768] sm:$0xff] %v629_v27  ;;  %v982_v30 = vpop.f32.mrb[119].mxu1 }
 0x206   :  { %2046 = vst [vmem:[#allocation2 + $0x778] sm:$0xff] %v982_v30  ;;  %2688 = vmatmul.mubr.msk.bf16.gmra.mrb[224].mxu0 %vm202_vm0, %v3193_v14 }
 0x207   :  { %2768 = vmatmul.mubr.msk.bf16.gmra.mrb[224].mxu1 %vm202_vm0, %v3193_v14  ;;  %2689 = vmatprep.mubr.msk.bf16.mxu0 %vm202_vm0, %v3235_v41 }
 0x208   :  { %2769 = vmatprep.mubr.msk.bf16.mxu1 %vm202_vm0, %v3235_v41 }
 0x209   :  { %v633_v0 = vpop.f32.mrb[120].mxu0 }
 0x20a   :  { %2047 = vst [vmem:[#allocation2 + $0x780] sm:$0xff] %v633_v0  ;;  %v986_v61 = vpop.f32.mrb[120].mxu1  ;;  %v635_v21 = vpop.f32.mrb[121].mxu0 }
 0x20b   :  { %2049 = vst [vmem:[#allocation2 + $0x790] sm:$0xff] %v986_v61  ;;  %2048 = vst [vmem:[#allocation2 + $0x788] sm:$0xff] %v635_v21  ;;  %v988_v60 = vpop.f32.mrb[121].mxu1  ;;  %v637_v62 = vpop.f32.mrb[122].mxu0 }
 0x20c   :  { %2050 = vst [vmem:[#allocation2 + $0x798] sm:$0xff] %v988_v60  ;;  %2051 = vst [vmem:[#allocation2 + $0x7a0] sm:$0xff] %v637_v62  ;;  %v990_v3 = vpop.f32.mrb[122].mxu1  ;;  %v639_v36 = vpop.f32.mrb[123].mxu0 }
 0x20d   :  { %2053 = vst [vmem:[#allocation2 + $0x7b0] sm:$0xff] %v990_v3  ;;  %2052 = vst [vmem:[#allocation2 + $0x7a8] sm:$0xff] %v639_v36  ;;  %v992_v14 = vpop.f32.mrb[123].mxu1 }
 0x20e   :  { %2054 = vst [vmem:[#allocation2 + $0x7b8] sm:$0xff] %v992_v14  ;;  %2690 = vmatmul.mubr.msk.bf16.gmra.mrb[228].mxu0 %vm202_vm0, %v3235_v41 }
 0x20f   :  { %2770 = vmatmul.mubr.msk.bf16.gmra.mrb[228].mxu1 %vm202_vm0, %v3235_v41  ;;  %2691 = vmatprep.mubr.msk.bf16.mxu0 %vm202_vm0, %v3283_v5 }
 0x210   :  { %2771 = vmatprep.mubr.msk.bf16.mxu1 %vm202_vm0, %v3283_v5 }
 0x211   :  { %v643_v50 = vpop.f32.mrb[124].mxu0 }
 0x212   :  { %2055 = vst [vmem:[#allocation2 + $0x7c0] sm:$0xff] %v643_v50  ;;  %v996_v48 = vpop.f32.mrb[124].mxu1  ;;  %v645_v34 = vpop.f32.mrb[125].mxu0 }
 0x213   :  { %2057 = vst [vmem:[#allocation2 + $0x7d0] sm:$0xff] %v996_v48  ;;  %2056 = vst [vmem:[#allocation2 + $0x7c8] sm:$0xff] %v645_v34  ;;  %v998_v7 = vpop.f32.mrb[125].mxu1  ;;  %v647_v8 = vpop.f32.mrb[126].mxu0 }
 0x214   :  { %2058 = vst [vmem:[#allocation2 + $0x7d8] sm:$0xff] %v998_v7  ;;  %2059 = vst [vmem:[#allocation2 + $0x7e0] sm:$0xff] %v647_v8  ;;  %v1000_v12 = vpop.f32.mrb[126].mxu1  ;;  %v649_v46 = vpop.f32.mrb[127].mxu0 }
 0x215   :  { %2061 = vst [vmem:[#allocation2 + $0x7f0] sm:$0xff] %v1000_v12  ;;  %2060 = vst [vmem:[#allocation2 + $0x7e8] sm:$0xff] %v649_v46  ;;  %v1002_v41 = vpop.f32.mrb[127].mxu1 }
 0x216   :  { %2062 = vst [vmem:[#allocation2 + $0x7f8] sm:$0xff] %v1002_v41  ;;  %2692 = vmatmul.mubr.msk.bf16.gmra.mrb[232].mxu0 %vm202_vm0, %v3283_v5 }
 0x217   :  { %2772 = vmatmul.mubr.msk.bf16.gmra.mrb[232].mxu1 %vm202_vm0, %v3283_v5  ;;  %2693 = vmatprep.mubr.msk.bf16.mxu0 %vm202_vm0, %v3331_v37 }
 0x218   :  { %2773 = vmatprep.mubr.msk.bf16.mxu1 %vm202_vm0, %v3331_v37 }
 0x219   :  { %v1135_v15 = vpop.f32.mrb[128].mxu0 }
 0x21a   :  { %2063 = vst [vmem:[#allocation2 + $0x800] sm:$0xff] %v1135_v15  ;;  %v1488_v19 = vpop.f32.mrb[128].mxu1  ;;  %v1137_v18 = vpop.f32.mrb[129].mxu0 }
 0x21b   :  { %2065 = vst [vmem:[#allocation2 + $0x810] sm:$0xff] %v1488_v19  ;;  %2064 = vst [vmem:[#allocation2 + $0x808] sm:$0xff] %v1137_v18  ;;  %v1490_v25 = vpop.f32.mrb[129].mxu1  ;;  %v1139_v6 = vpop.f32.mrb[130].mxu0 }
 0x21c   :  { %2066 = vst [vmem:[#allocation2 + $0x818] sm:$0xff] %v1490_v25  ;;  %2067 = vst [vmem:[#allocation2 + $0x820] sm:$0xff] %v1139_v6  ;;  %v1492_v39 = vpop.f32.mrb[130].mxu1  ;;  %v1141_v53 = vpop.f32.mrb[131].mxu0 }
 0x21d   :  { %2069 = vst [vmem:[#allocation2 + $0x830] sm:$0xff] %v1492_v39  ;;  %2068 = vst [vmem:[#allocation2 + $0x828] sm:$0xff] %v1141_v53  ;;  %v1494_v5 = vpop.f32.mrb[131].mxu1 }
 0x21e   :  { %2070 = vst [vmem:[#allocation2 + $0x838] sm:$0xff] %v1494_v5  ;;  %2694 = vmatmul.mubr.msk.bf16.gmra.mrb[236].mxu0 %vm202_vm0, %v3331_v37 }
 0x21f   :  { %2774 = vmatmul.mubr.msk.bf16.gmra.mrb[236].mxu1 %vm202_vm0, %v3331_v37  ;;  %2695 = vmatprep.mubr.msk.bf16.mxu0 %vm202_vm0, %v3379_v11 }
 0x220   :  { %2775 = vmatprep.mubr.msk.bf16.mxu1 %vm202_vm0, %v3379_v11 }
 0x221   :  { %v1145_v4 = vpop.f32.mrb[132].mxu0 }
 0x222   :  { %2071 = vst [vmem:[#allocation2 + $0x840] sm:$0xff] %v1145_v4  ;;  %v1498_v24 = vpop.f32.mrb[132].mxu1  ;;  %v1147_v54 = vpop.f32.mrb[133].mxu0 }
 0x223   :  { %2073 = vst [vmem:[#allocation2 + $0x850] sm:$0xff] %v1498_v24  ;;  %2072 = vst [vmem:[#allocation2 + $0x848] sm:$0xff] %v1147_v54  ;;  %v1500_v42 = vpop.f32.mrb[133].mxu1  ;;  %v1149_v33 = vpop.f32.mrb[134].mxu0 }
 0x224   :  { %2074 = vst [vmem:[#allocation2 + $0x858] sm:$0xff] %v1500_v42  ;;  %2075 = vst [vmem:[#allocation2 + $0x860] sm:$0xff] %v1149_v33  ;;  %v1502_v13 = vpop.f32.mrb[134].mxu1  ;;  %v1151_v2 = vpop.f32.mrb[135].mxu0 }
 0x225   :  { %2077 = vst [vmem:[#allocation2 + $0x870] sm:$0xff] %v1502_v13  ;;  %2076 = vst [vmem:[#allocation2 + $0x868] sm:$0xff] %v1151_v2  ;;  %v1504_v37 = vpop.f32.mrb[135].mxu1 }
 0x226   :  { %2078 = vst [vmem:[#allocation2 + $0x878] sm:$0xff] %v1504_v37  ;;  %2696 = vmatmul.mubr.msk.bf16.gmra.mrb[240].mxu0 %vm202_vm0, %v3379_v11 }
 0x227   :  { %2776 = vmatmul.mubr.msk.bf16.gmra.mrb[240].mxu1 %vm202_vm0, %v3379_v11  ;;  %2697 = vmatprep.mubr.msk.bf16.mxu0 %vm202_vm0, %v3439_v58 }
 0x228   :  { %2777 = vmatprep.mubr.msk.bf16.mxu1 %vm202_vm0, %v3439_v58 }
 0x229   :  { %v1155_v35 = vpop.f32.mrb[136].mxu0 }
 0x22a   :  { %2079 = vst [vmem:[#allocation2 + $0x880] sm:$0xff] %v1155_v35  ;;  %v1508_v23 = vpop.f32.mrb[136].mxu1  ;;  %v1157_v32 = vpop.f32.mrb[137].mxu0 }
 0x22b   :  { %2081 = vst [vmem:[#allocation2 + $0x890] sm:$0xff] %v1508_v23  ;;  %2080 = vst [vmem:[#allocation2 + $0x888] sm:$0xff] %v1157_v32  ;;  %v1510_v29 = vpop.f32.mrb[137].mxu1  ;;  %v1159_v43 = vpop.f32.mrb[138].mxu0 }
 0x22c   :  { %2082 = vst [vmem:[#allocation2 + $0x898] sm:$0xff] %v1510_v29  ;;  %2083 = vst [vmem:[#allocation2 + $0x8a0] sm:$0xff] %v1159_v43  ;;  %v1512_v51 = vpop.f32.mrb[138].mxu1  ;;  %v1161_v10 = vpop.f32.mrb[139].mxu0 }
 0x22d   :  { %2085 = vst [vmem:[#allocation2 + $0x8b0] sm:$0xff] %v1512_v51  ;;  %2084 = vst [vmem:[#allocation2 + $0x8a8] sm:$0xff] %v1161_v10  ;;  %v1514_v11 = vpop.f32.mrb[139].mxu1 }
 0x22e   :  { %2086 = vst [vmem:[#allocation2 + $0x8b8] sm:$0xff] %v1514_v11  ;;  %2698 = vmatmul.mubr.msk.bf16.gmra.mrb[244].mxu0 %vm202_vm0, %v3439_v58 }
 0x22f   :  { %2778 = vmatmul.mubr.msk.bf16.gmra.mrb[244].mxu1 %vm202_vm0, %v3439_v58  ;;  %2699 = vmatprep.mubr.msk.bf16.mxu0 %vm202_vm0, %v3511_v44 }
 0x230   :  { %2779 = vmatprep.mubr.msk.bf16.mxu1 %vm202_vm0, %v3511_v44 }
 0x231   :  { %v1165_v38 = vpop.f32.mrb[140].mxu0 }
 0x232   :  { %2087 = vst [vmem:[#allocation2 + $0x8c0] sm:$0xff] %v1165_v38  ;;  %v1518_v28 = vpop.f32.mrb[140].mxu1  ;;  %v1167_v63 = vpop.f32.mrb[141].mxu0 }
 0x233   :  { %2089 = vst [vmem:[#allocation2 + $0x8d0] sm:$0xff] %v1518_v28  ;;  %2088 = vst [vmem:[#allocation2 + $0x8c8] sm:$0xff] %v1167_v63  ;;  %v1520_v49 = vpop.f32.mrb[141].mxu1  ;;  %v1169_v16 = vpop.f32.mrb[142].mxu0 }
 0x234   :  { %2090 = vst [vmem:[#allocation2 + $0x8d8] sm:$0xff] %v1520_v49  ;;  %2091 = vst [vmem:[#allocation2 + $0x8e0] sm:$0xff] %v1169_v16  ;;  %v1522_v47 = vpop.f32.mrb[142].mxu1  ;;  %v1171_v55 = vpop.f32.mrb[143].mxu0 }
 0x235   :  { %2093 = vst [vmem:[#allocation2 + $0x8f0] sm:$0xff] %v1522_v47  ;;  %2092 = vst [vmem:[#allocation2 + $0x8e8] sm:$0xff] %v1171_v55  ;;  %v1524_v58 = vpop.f32.mrb[143].mxu1 }
 0x236   :  { %2094 = vst [vmem:[#allocation2 + $0x8f8] sm:$0xff] %v1524_v58  ;;  %2700 = vmatmul.mubr.msk.bf16.gmra.mrb[248].mxu0 %vm202_vm0, %v3511_v44 }
 0x237   :  { %2780 = vmatmul.mubr.msk.bf16.gmra.mrb[248].mxu1 %vm202_vm0, %v3511_v44  ;;  %2701 = vmatprep.mubr.msk.bf16.mxu0 %vm202_vm0, %v3583_v22 }
 0x238   :  { %2781 = vmatprep.mubr.msk.bf16.mxu1 %vm202_vm0, %v3583_v22 }
 0x239   :  { %v1175_v57 = vpop.f32.mrb[144].mxu0 }
 0x23a   :  { %2095 = vst [vmem:[#allocation2 + $0x900] sm:$0xff] %v1175_v57  ;;  %v1528_v1 = vpop.f32.mrb[144].mxu1  ;;  %v1177_v40 = vpop.f32.mrb[145].mxu0 }
 0x23b   :  { %2097 = vst [vmem:[#allocation2 + $0x910] sm:$0xff] %v1528_v1  ;;  %2096 = vst [vmem:[#allocation2 + $0x908] sm:$0xff] %v1177_v40  ;;  %v1530_v9 = vpop.f32.mrb[145].mxu1  ;;  %v1179_v17 = vpop.f32.mrb[146].mxu0 }
 0x23c   :  { %2098 = vst [vmem:[#allocation2 + $0x918] sm:$0xff] %v1530_v9  ;;  %2099 = vst [vmem:[#allocation2 + $0x920] sm:$0xff] %v1179_v17  ;;  %v1532_v56 = vpop.f32.mrb[146].mxu1  ;;  %v1181_v52 = vpop.f32.mrb[147].mxu0 }
 0x23d   :  { %2101 = vst [vmem:[#allocation2 + $0x930] sm:$0xff] %v1532_v56  ;;  %2100 = vst [vmem:[#allocation2 + $0x928] sm:$0xff] %v1181_v52  ;;  %v1534_v44 = vpop.f32.mrb[147].mxu1 }
 0x23e   :  { %2102 = vst [vmem:[#allocation2 + $0x938] sm:$0xff] %v1534_v44  ;;  %2702 = vmatmul.mubr.msk.bf16.gmra.mrb[252].mxu0 %vm202_vm0, %v3583_v22 }
 0x23f   :  { %2782 = vmatmul.mubr.msk.bf16.gmra.mrb[252].mxu1 %vm202_vm0, %v3583_v22 }
 0x241   :  { %v1185_v31 = vpop.f32.mrb[148].mxu0 }
 0x242   :  { %2103 = vst [vmem:[#allocation2 + $0x940] sm:$0xff] %v1185_v31  ;;  %v1538_v45 = vpop.f32.mrb[148].mxu1  ;;  %v1187_v59 = vpop.f32.mrb[149].mxu0 }
 0x243   :  { %2105 = vst [vmem:[#allocation2 + $0x950] sm:$0xff] %v1538_v45  ;;  %2104 = vst [vmem:[#allocation2 + $0x948] sm:$0xff] %v1187_v59  ;;  %v1540_v20 = vpop.f32.mrb[149].mxu1  ;;  %v1189_v26 = vpop.f32.mrb[150].mxu0 }
 0x244   :  { %2106 = vst [vmem:[#allocation2 + $0x958] sm:$0xff] %v1540_v20  ;;  %2107 = vst [vmem:[#allocation2 + $0x960] sm:$0xff] %v1189_v26  ;;  %v1542_v27 = vpop.f32.mrb[150].mxu1  ;;  %v1191_v30 = vpop.f32.mrb[151].mxu0 }
 0x245   :  { %2109 = vst [vmem:[#allocation2 + $0x970] sm:$0xff] %v1542_v27  ;;  %2108 = vst [vmem:[#allocation2 + $0x968] sm:$0xff] %v1191_v30  ;;  %v1544_v0 = vpop.f32.mrb[151].mxu1 }
 0x246   :  { %2110 = vst [vmem:[#allocation2 + $0x978] sm:$0xff] %v1544_v0 }
 0x249   :  { %v1195_v61 = vpop.f32.mrb[152].mxu0 }
 0x24a   :  { %2111 = vst [vmem:[#allocation2 + $0x980] sm:$0xff] %v1195_v61  ;;  %v1548_v21 = vpop.f32.mrb[152].mxu1  ;;  %v1197_v22 = vpop.f32.mrb[153].mxu0 }
 0x24b   :  { %2113 = vst [vmem:[#allocation2 + $0x990] sm:$0xff] %v1548_v21  ;;  %2112 = vst [vmem:[#allocation2 + $0x988] sm:$0xff] %v1197_v22  ;;  %v1550_v60 = vpop.f32.mrb[153].mxu1  ;;  %v1199_v62 = vpop.f32.mrb[154].mxu0 }
 0x24c   :  { %2114 = vst [vmem:[#allocation2 + $0x998] sm:$0xff] %v1550_v60  ;;  %2115 = vst [vmem:[#allocation2 + $0x9a0] sm:$0xff] %v1199_v62  ;;  %v1552_v3 = vpop.f32.mrb[154].mxu1  ;;  %v1201_v36 = vpop.f32.mrb[155].mxu0 }
 0x24d   :  { %2117 = vst [vmem:[#allocation2 + $0x9b0] sm:$0xff] %v1552_v3  ;;  %2116 = vst [vmem:[#allocation2 + $0x9a8] sm:$0xff] %v1201_v36  ;;  %v1554_v14 = vpop.f32.mrb[155].mxu1 }
 0x24e   :  { %2118 = vst [vmem:[#allocation2 + $0x9b8] sm:$0xff] %v1554_v14 }
 0x251   :  { %v1205_v50 = vpop.f32.mrb[156].mxu0 }
 0x252   :  { %2119 = vst [vmem:[#allocation2 + $0x9c0] sm:$0xff] %v1205_v50  ;;  %v1558_v48 = vpop.f32.mrb[156].mxu1  ;;  %v1207_v34 = vpop.f32.mrb[157].mxu0 }
 0x253   :  { %2121 = vst [vmem:[#allocation2 + $0x9d0] sm:$0xff] %v1558_v48  ;;  %2120 = vst [vmem:[#allocation2 + $0x9c8] sm:$0xff] %v1207_v34  ;;  %v1560_v7 = vpop.f32.mrb[157].mxu1  ;;  %v1209_v8 = vpop.f32.mrb[158].mxu0 }
 0x254   :  { %2122 = vst [vmem:[#allocation2 + $0x9d8] sm:$0xff] %v1560_v7  ;;  %2123 = vst [vmem:[#allocation2 + $0x9e0] sm:$0xff] %v1209_v8  ;;  %v1562_v12 = vpop.f32.mrb[158].mxu1  ;;  %v1211_v46 = vpop.f32.mrb[159].mxu0 }
 0x255   :  { %2125 = vst [vmem:[#allocation2 + $0x9f0] sm:$0xff] %v1562_v12  ;;  %2124 = vst [vmem:[#allocation2 + $0x9e8] sm:$0xff] %v1211_v46  ;;  %v1564_v41 = vpop.f32.mrb[159].mxu1 }
 0x256   :  { %2126 = vst [vmem:[#allocation2 + $0x9f8] sm:$0xff] %v1564_v41 }
 0x259   :  { %v1215_v15 = vpop.f32.mrb[160].mxu0 }
 0x25a   :  { %2127 = vst [vmem:[#allocation2 + $0xa00] sm:$0xff] %v1215_v15  ;;  %v1568_v19 = vpop.f32.mrb[160].mxu1  ;;  %v1217_v18 = vpop.f32.mrb[161].mxu0 }
 0x25b   :  { %2129 = vst [vmem:[#allocation2 + $0xa10] sm:$0xff] %v1568_v19  ;;  %2128 = vst [vmem:[#allocation2 + $0xa08] sm:$0xff] %v1217_v18  ;;  %v1570_v25 = vpop.f32.mrb[161].mxu1  ;;  %v1219_v6 = vpop.f32.mrb[162].mxu0 }
 0x25c   :  { %2130 = vst [vmem:[#allocation2 + $0xa18] sm:$0xff] %v1570_v25  ;;  %2131 = vst [vmem:[#allocation2 + $0xa20] sm:$0xff] %v1219_v6  ;;  %v1572_v39 = vpop.f32.mrb[162].mxu1  ;;  %v1221_v53 = vpop.f32.mrb[163].mxu0 }
 0x25d   :  { %2133 = vst [vmem:[#allocation2 + $0xa30] sm:$0xff] %v1572_v39  ;;  %2132 = vst [vmem:[#allocation2 + $0xa28] sm:$0xff] %v1221_v53  ;;  %v1574_v5 = vpop.f32.mrb[163].mxu1 }
 0x25e   :  { %2134 = vst [vmem:[#allocation2 + $0xa38] sm:$0xff] %v1574_v5 }
 0x261   :  { %v1225_v4 = vpop.f32.mrb[164].mxu0 }
 0x262   :  { %2135 = vst [vmem:[#allocation2 + $0xa40] sm:$0xff] %v1225_v4  ;;  %v1578_v24 = vpop.f32.mrb[164].mxu1  ;;  %v1227_v54 = vpop.f32.mrb[165].mxu0 }
 0x263   :  { %2137 = vst [vmem:[#allocation2 + $0xa50] sm:$0xff] %v1578_v24  ;;  %2136 = vst [vmem:[#allocation2 + $0xa48] sm:$0xff] %v1227_v54  ;;  %v1580_v42 = vpop.f32.mrb[165].mxu1  ;;  %v1229_v33 = vpop.f32.mrb[166].mxu0 }
 0x264   :  { %2138 = vst [vmem:[#allocation2 + $0xa58] sm:$0xff] %v1580_v42  ;;  %2139 = vst [vmem:[#allocation2 + $0xa60] sm:$0xff] %v1229_v33  ;;  %v1582_v13 = vpop.f32.mrb[166].mxu1  ;;  %v1231_v2 = vpop.f32.mrb[167].mxu0 }
 0x265   :  { %2141 = vst [vmem:[#allocation2 + $0xa70] sm:$0xff] %v1582_v13  ;;  %2140 = vst [vmem:[#allocation2 + $0xa68] sm:$0xff] %v1231_v2  ;;  %v1584_v37 = vpop.f32.mrb[167].mxu1 }
 0x266   :  { %2142 = vst [vmem:[#allocation2 + $0xa78] sm:$0xff] %v1584_v37 }
 0x269   :  { %v1235_v35 = vpop.f32.mrb[168].mxu0 }
 0x26a   :  { %2143 = vst [vmem:[#allocation2 + $0xa80] sm:$0xff] %v1235_v35  ;;  %v1588_v23 = vpop.f32.mrb[168].mxu1  ;;  %v1237_v32 = vpop.f32.mrb[169].mxu0 }
 0x26b   :  { %2145 = vst [vmem:[#allocation2 + $0xa90] sm:$0xff] %v1588_v23  ;;  %2144 = vst [vmem:[#allocation2 + $0xa88] sm:$0xff] %v1237_v32  ;;  %v1590_v29 = vpop.f32.mrb[169].mxu1  ;;  %v1239_v43 = vpop.f32.mrb[170].mxu0 }
 0x26c   :  { %2146 = vst [vmem:[#allocation2 + $0xa98] sm:$0xff] %v1590_v29  ;;  %2147 = vst [vmem:[#allocation2 + $0xaa0] sm:$0xff] %v1239_v43  ;;  %v1592_v51 = vpop.f32.mrb[170].mxu1  ;;  %v1241_v10 = vpop.f32.mrb[171].mxu0 }
 0x26d   :  { %2149 = vst [vmem:[#allocation2 + $0xab0] sm:$0xff] %v1592_v51  ;;  %2148 = vst [vmem:[#allocation2 + $0xaa8] sm:$0xff] %v1241_v10  ;;  %v1594_v11 = vpop.f32.mrb[171].mxu1 }
 0x26e   :  { %2150 = vst [vmem:[#allocation2 + $0xab8] sm:$0xff] %v1594_v11 }
 0x271   :  { %v1245_v38 = vpop.f32.mrb[172].mxu0 }
 0x272   :  { %2151 = vst [vmem:[#allocation2 + $0xac0] sm:$0xff] %v1245_v38  ;;  %v1598_v28 = vpop.f32.mrb[172].mxu1  ;;  %v1247_v63 = vpop.f32.mrb[173].mxu0 }
 0x273   :  { %2153 = vst [vmem:[#allocation2 + $0xad0] sm:$0xff] %v1598_v28  ;;  %2152 = vst [vmem:[#allocation2 + $0xac8] sm:$0xff] %v1247_v63  ;;  %v1600_v49 = vpop.f32.mrb[173].mxu1  ;;  %v1249_v16 = vpop.f32.mrb[174].mxu0 }
 0x274   :  { %2154 = vst [vmem:[#allocation2 + $0xad8] sm:$0xff] %v1600_v49  ;;  %2155 = vst [vmem:[#allocation2 + $0xae0] sm:$0xff] %v1249_v16  ;;  %v1602_v47 = vpop.f32.mrb[174].mxu1  ;;  %v1251_v55 = vpop.f32.mrb[175].mxu0 }
 0x275   :  { %2157 = vst [vmem:[#allocation2 + $0xaf0] sm:$0xff] %v1602_v47  ;;  %2156 = vst [vmem:[#allocation2 + $0xae8] sm:$0xff] %v1251_v55  ;;  %v1604_v58 = vpop.f32.mrb[175].mxu1 }
 0x276   :  { %2158 = vst [vmem:[#allocation2 + $0xaf8] sm:$0xff] %v1604_v58 }
 0x279   :  { %v1255_v57 = vpop.f32.mrb[176].mxu0 }
 0x27a   :  { %2159 = vst [vmem:[#allocation2 + $0xb00] sm:$0xff] %v1255_v57  ;;  %v1608_v1 = vpop.f32.mrb[176].mxu1  ;;  %v1257_v40 = vpop.f32.mrb[177].mxu0 }
 0x27b   :  { %2161 = vst [vmem:[#allocation2 + $0xb10] sm:$0xff] %v1608_v1  ;;  %2160 = vst [vmem:[#allocation2 + $0xb08] sm:$0xff] %v1257_v40  ;;  %v1610_v9 = vpop.f32.mrb[177].mxu1  ;;  %v1259_v17 = vpop.f32.mrb[178].mxu0 }
 0x27c   :  { %2162 = vst [vmem:[#allocation2 + $0xb18] sm:$0xff] %v1610_v9  ;;  %2163 = vst [vmem:[#allocation2 + $0xb20] sm:$0xff] %v1259_v17  ;;  %v1612_v56 = vpop.f32.mrb[178].mxu1  ;;  %v1261_v52 = vpop.f32.mrb[179].mxu0 }
 0x27d   :  { %2165 = vst [vmem:[#allocation2 + $0xb30] sm:$0xff] %v1612_v56  ;;  %2164 = vst [vmem:[#allocation2 + $0xb28] sm:$0xff] %v1261_v52  ;;  %v1614_v44 = vpop.f32.mrb[179].mxu1 }
 0x27e   :  { %2166 = vst [vmem:[#allocation2 + $0xb38] sm:$0xff] %v1614_v44 }
 0x281   :  { %v1265_v31 = vpop.f32.mrb[180].mxu0 }
 0x282   :  { %2167 = vst [vmem:[#allocation2 + $0xb40] sm:$0xff] %v1265_v31  ;;  %v1618_v45 = vpop.f32.mrb[180].mxu1  ;;  %v1267_v59 = vpop.f32.mrb[181].mxu0 }
 0x283   :  { %2169 = vst [vmem:[#allocation2 + $0xb50] sm:$0xff] %v1618_v45  ;;  %2168 = vst [vmem:[#allocation2 + $0xb48] sm:$0xff] %v1267_v59  ;;  %v1620_v20 = vpop.f32.mrb[181].mxu1  ;;  %v1269_v26 = vpop.f32.mrb[182].mxu0 }
 0x284   :  { %2170 = vst [vmem:[#allocation2 + $0xb58] sm:$0xff] %v1620_v20  ;;  %2171 = vst [vmem:[#allocation2 + $0xb60] sm:$0xff] %v1269_v26  ;;  %v1622_v27 = vpop.f32.mrb[182].mxu1  ;;  %v1271_v30 = vpop.f32.mrb[183].mxu0 }
 0x285   :  { %2173 = vst [vmem:[#allocation2 + $0xb70] sm:$0xff] %v1622_v27  ;;  %2172 = vst [vmem:[#allocation2 + $0xb68] sm:$0xff] %v1271_v30  ;;  %v1624_v0 = vpop.f32.mrb[183].mxu1 }
 0x286   :  { %2174 = vst [vmem:[#allocation2 + $0xb78] sm:$0xff] %v1624_v0 }
 0x289   :  { %v1275_v61 = vpop.f32.mrb[184].mxu0 }
 0x28a   :  { %2175 = vst [vmem:[#allocation2 + $0xb80] sm:$0xff] %v1275_v61  ;;  %v1628_v21 = vpop.f32.mrb[184].mxu1  ;;  %v1277_v22 = vpop.f32.mrb[185].mxu0 }
 0x28b   :  { %2177 = vst [vmem:[#allocation2 + $0xb90] sm:$0xff] %v1628_v21  ;;  %2176 = vst [vmem:[#allocation2 + $0xb88] sm:$0xff] %v1277_v22  ;;  %v1630_v60 = vpop.f32.mrb[185].mxu1  ;;  %v1279_v62 = vpop.f32.mrb[186].mxu0 }
 0x28c   :  { %2178 = vst [vmem:[#allocation2 + $0xb98] sm:$0xff] %v1630_v60  ;;  %2179 = vst [vmem:[#allocation2 + $0xba0] sm:$0xff] %v1279_v62  ;;  %v1632_v3 = vpop.f32.mrb[186].mxu1  ;;  %v1281_v36 = vpop.f32.mrb[187].mxu0 }
 0x28d   :  { %2181 = vst [vmem:[#allocation2 + $0xbb0] sm:$0xff] %v1632_v3  ;;  %2180 = vst [vmem:[#allocation2 + $0xba8] sm:$0xff] %v1281_v36  ;;  %v1634_v14 = vpop.f32.mrb[187].mxu1 }
 0x28e   :  { %2182 = vst [vmem:[#allocation2 + $0xbb8] sm:$0xff] %v1634_v14 }
 0x291   :  { %v1285_v50 = vpop.f32.mrb[188].mxu0 }
 0x292   :  { %2183 = vst [vmem:[#allocation2 + $0xbc0] sm:$0xff] %v1285_v50  ;;  %v1638_v48 = vpop.f32.mrb[188].mxu1  ;;  %v1287_v34 = vpop.f32.mrb[189].mxu0 }
 0x293   :  { %2185 = vst [vmem:[#allocation2 + $0xbd0] sm:$0xff] %v1638_v48  ;;  %2184 = vst [vmem:[#allocation2 + $0xbc8] sm:$0xff] %v1287_v34  ;;  %v1640_v7 = vpop.f32.mrb[189].mxu1  ;;  %v1289_v8 = vpop.f32.mrb[190].mxu0 }
 0x294   :  { %2186 = vst [vmem:[#allocation2 + $0xbd8] sm:$0xff] %v1640_v7  ;;  %2187 = vst [vmem:[#allocation2 + $0xbe0] sm:$0xff] %v1289_v8  ;;  %v1642_v12 = vpop.f32.mrb[190].mxu1  ;;  %v1291_v46 = vpop.f32.mrb[191].mxu0 }
 0x295   :  { %2189 = vst [vmem:[#allocation2 + $0xbf0] sm:$0xff] %v1642_v12  ;;  %2188 = vst [vmem:[#allocation2 + $0xbe8] sm:$0xff] %v1291_v46  ;;  %v1644_v41 = vpop.f32.mrb[191].mxu1 }
 0x296   :  { %2190 = vst [vmem:[#allocation2 + $0xbf8] sm:$0xff] %v1644_v41 }
 0x299   :  { %v1295_v15 = vpop.f32.mrb[192].mxu0 }
 0x29a   :  { %2191 = vst [vmem:[#allocation2 + $0xc00] sm:$0xff] %v1295_v15  ;;  %v1648_v19 = vpop.f32.mrb[192].mxu1  ;;  %v1297_v18 = vpop.f32.mrb[193].mxu0 }
 0x29b   :  { %2193 = vst [vmem:[#allocation2 + $0xc10] sm:$0xff] %v1648_v19  ;;  %2192 = vst [vmem:[#allocation2 + $0xc08] sm:$0xff] %v1297_v18  ;;  %v1650_v25 = vpop.f32.mrb[193].mxu1  ;;  %v1299_v6 = vpop.f32.mrb[194].mxu0 }
 0x29c   :  { %2194 = vst [vmem:[#allocation2 + $0xc18] sm:$0xff] %v1650_v25  ;;  %2195 = vst [vmem:[#allocation2 + $0xc20] sm:$0xff] %v1299_v6  ;;  %v1652_v39 = vpop.f32.mrb[194].mxu1  ;;  %v1301_v53 = vpop.f32.mrb[195].mxu0 }
 0x29d   :  { %2197 = vst [vmem:[#allocation2 + $0xc30] sm:$0xff] %v1652_v39  ;;  %2196 = vst [vmem:[#allocation2 + $0xc28] sm:$0xff] %v1301_v53  ;;  %v1654_v5 = vpop.f32.mrb[195].mxu1 }
 0x29e   :  { %2198 = vst [vmem:[#allocation2 + $0xc38] sm:$0xff] %v1654_v5 }
 0x2a1   :  { %v1305_v4 = vpop.f32.mrb[196].mxu0 }
 0x2a2   :  { %2199 = vst [vmem:[#allocation2 + $0xc40] sm:$0xff] %v1305_v4  ;;  %v1658_v24 = vpop.f32.mrb[196].mxu1  ;;  %v1307_v54 = vpop.f32.mrb[197].mxu0 }
 0x2a3   :  { %2201 = vst [vmem:[#allocation2 + $0xc50] sm:$0xff] %v1658_v24  ;;  %2200 = vst [vmem:[#allocation2 + $0xc48] sm:$0xff] %v1307_v54  ;;  %v1660_v42 = vpop.f32.mrb[197].mxu1  ;;  %v1309_v33 = vpop.f32.mrb[198].mxu0 }
 0x2a4   :  { %2202 = vst [vmem:[#allocation2 + $0xc58] sm:$0xff] %v1660_v42  ;;  %2203 = vst [vmem:[#allocation2 + $0xc60] sm:$0xff] %v1309_v33  ;;  %v1662_v13 = vpop.f32.mrb[198].mxu1  ;;  %v1311_v2 = vpop.f32.mrb[199].mxu0 }
 0x2a5   :  { %2205 = vst [vmem:[#allocation2 + $0xc70] sm:$0xff] %v1662_v13  ;;  %2204 = vst [vmem:[#allocation2 + $0xc68] sm:$0xff] %v1311_v2  ;;  %v1664_v37 = vpop.f32.mrb[199].mxu1 }
 0x2a6   :  { %2206 = vst [vmem:[#allocation2 + $0xc78] sm:$0xff] %v1664_v37 }
 0x2a9   :  { %v1315_v35 = vpop.f32.mrb[200].mxu0 }
 0x2aa   :  { %2207 = vst [vmem:[#allocation2 + $0xc80] sm:$0xff] %v1315_v35  ;;  %v1668_v23 = vpop.f32.mrb[200].mxu1  ;;  %v1317_v32 = vpop.f32.mrb[201].mxu0 }
 0x2ab   :  { %2209 = vst [vmem:[#allocation2 + $0xc90] sm:$0xff] %v1668_v23  ;;  %2208 = vst [vmem:[#allocation2 + $0xc88] sm:$0xff] %v1317_v32  ;;  %v1670_v29 = vpop.f32.mrb[201].mxu1  ;;  %v1319_v43 = vpop.f32.mrb[202].mxu0 }
 0x2ac   :  { %2210 = vst [vmem:[#allocation2 + $0xc98] sm:$0xff] %v1670_v29  ;;  %2211 = vst [vmem:[#allocation2 + $0xca0] sm:$0xff] %v1319_v43  ;;  %v1672_v51 = vpop.f32.mrb[202].mxu1  ;;  %v1321_v10 = vpop.f32.mrb[203].mxu0 }
 0x2ad   :  { %2213 = vst [vmem:[#allocation2 + $0xcb0] sm:$0xff] %v1672_v51  ;;  %2212 = vst [vmem:[#allocation2 + $0xca8] sm:$0xff] %v1321_v10  ;;  %v1674_v11 = vpop.f32.mrb[203].mxu1 }
 0x2ae   :  { %2214 = vst [vmem:[#allocation2 + $0xcb8] sm:$0xff] %v1674_v11 }
 0x2b1   :  { %v1325_v38 = vpop.f32.mrb[204].mxu0 }
 0x2b2   :  { %2215 = vst [vmem:[#allocation2 + $0xcc0] sm:$0xff] %v1325_v38  ;;  %v1678_v28 = vpop.f32.mrb[204].mxu1  ;;  %v1327_v63 = vpop.f32.mrb[205].mxu0 }
 0x2b3   :  { %2217 = vst [vmem:[#allocation2 + $0xcd0] sm:$0xff] %v1678_v28  ;;  %2216 = vst [vmem:[#allocation2 + $0xcc8] sm:$0xff] %v1327_v63  ;;  %v1680_v49 = vpop.f32.mrb[205].mxu1  ;;  %v1329_v16 = vpop.f32.mrb[206].mxu0 }
 0x2b4   :  { %2218 = vst [vmem:[#allocation2 + $0xcd8] sm:$0xff] %v1680_v49  ;;  %2219 = vst [vmem:[#allocation2 + $0xce0] sm:$0xff] %v1329_v16  ;;  %v1682_v47 = vpop.f32.mrb[206].mxu1  ;;  %v1331_v55 = vpop.f32.mrb[207].mxu0 }
 0x2b5   :  { %2221 = vst [vmem:[#allocation2 + $0xcf0] sm:$0xff] %v1682_v47  ;;  %2220 = vst [vmem:[#allocation2 + $0xce8] sm:$0xff] %v1331_v55  ;;  %v1684_v58 = vpop.f32.mrb[207].mxu1 }
 0x2b6   :  { %2222 = vst [vmem:[#allocation2 + $0xcf8] sm:$0xff] %v1684_v58 }
 0x2b9   :  { %v1335_v57 = vpop.f32.mrb[208].mxu0 }
 0x2ba   :  { %2223 = vst [vmem:[#allocation2 + $0xd00] sm:$0xff] %v1335_v57  ;;  %v1688_v1 = vpop.f32.mrb[208].mxu1  ;;  %v1337_v40 = vpop.f32.mrb[209].mxu0 }
 0x2bb   :  { %2225 = vst [vmem:[#allocation2 + $0xd10] sm:$0xff] %v1688_v1  ;;  %2224 = vst [vmem:[#allocation2 + $0xd08] sm:$0xff] %v1337_v40  ;;  %v1690_v9 = vpop.f32.mrb[209].mxu1  ;;  %v1339_v17 = vpop.f32.mrb[210].mxu0 }
 0x2bc   :  { %2226 = vst [vmem:[#allocation2 + $0xd18] sm:$0xff] %v1690_v9  ;;  %2227 = vst [vmem:[#allocation2 + $0xd20] sm:$0xff] %v1339_v17  ;;  %v1692_v56 = vpop.f32.mrb[210].mxu1  ;;  %v1341_v52 = vpop.f32.mrb[211].mxu0 }
 0x2bd   :  { %2229 = vst [vmem:[#allocation2 + $0xd30] sm:$0xff] %v1692_v56  ;;  %2228 = vst [vmem:[#allocation2 + $0xd28] sm:$0xff] %v1341_v52  ;;  %v1694_v44 = vpop.f32.mrb[211].mxu1 }
 0x2be   :  { %2230 = vst [vmem:[#allocation2 + $0xd38] sm:$0xff] %v1694_v44 }
 0x2c1   :  { %v1345_v31 = vpop.f32.mrb[212].mxu0 }
 0x2c2   :  { %2231 = vst [vmem:[#allocation2 + $0xd40] sm:$0xff] %v1345_v31  ;;  %v1698_v45 = vpop.f32.mrb[212].mxu1  ;;  %v1347_v59 = vpop.f32.mrb[213].mxu0 }
 0x2c3   :  { %2233 = vst [vmem:[#allocation2 + $0xd50] sm:$0xff] %v1698_v45  ;;  %2232 = vst [vmem:[#allocation2 + $0xd48] sm:$0xff] %v1347_v59  ;;  %v1700_v20 = vpop.f32.mrb[213].mxu1  ;;  %v1349_v26 = vpop.f32.mrb[214].mxu0 }
 0x2c4   :  { %2234 = vst [vmem:[#allocation2 + $0xd58] sm:$0xff] %v1700_v20  ;;  %2235 = vst [vmem:[#allocation2 + $0xd60] sm:$0xff] %v1349_v26  ;;  %v1702_v27 = vpop.f32.mrb[214].mxu1  ;;  %v1351_v30 = vpop.f32.mrb[215].mxu0 }
 0x2c5   :  { %2237 = vst [vmem:[#allocation2 + $0xd70] sm:$0xff] %v1702_v27  ;;  %2236 = vst [vmem:[#allocation2 + $0xd68] sm:$0xff] %v1351_v30  ;;  %v1704_v0 = vpop.f32.mrb[215].mxu1 }
 0x2c6   :  { %2238 = vst [vmem:[#allocation2 + $0xd78] sm:$0xff] %v1704_v0 }
 0x2c9   :  { %v1355_v61 = vpop.f32.mrb[216].mxu0 }
 0x2ca   :  { %2239 = vst [vmem:[#allocation2 + $0xd80] sm:$0xff] %v1355_v61  ;;  %v1708_v21 = vpop.f32.mrb[216].mxu1  ;;  %v1357_v22 = vpop.f32.mrb[217].mxu0 }
 0x2cb   :  { %2241 = vst [vmem:[#allocation2 + $0xd90] sm:$0xff] %v1708_v21  ;;  %2240 = vst [vmem:[#allocation2 + $0xd88] sm:$0xff] %v1357_v22  ;;  %v1710_v60 = vpop.f32.mrb[217].mxu1  ;;  %v1359_v62 = vpop.f32.mrb[218].mxu0 }
 0x2cc   :  { %2242 = vst [vmem:[#allocation2 + $0xd98] sm:$0xff] %v1710_v60  ;;  %2243 = vst [vmem:[#allocation2 + $0xda0] sm:$0xff] %v1359_v62  ;;  %v1712_v3 = vpop.f32.mrb[218].mxu1  ;;  %v1361_v36 = vpop.f32.mrb[219].mxu0 }
 0x2cd   :  { %2245 = vst [vmem:[#allocation2 + $0xdb0] sm:$0xff] %v1712_v3  ;;  %2244 = vst [vmem:[#allocation2 + $0xda8] sm:$0xff] %v1361_v36  ;;  %v1714_v14 = vpop.f32.mrb[219].mxu1 }
 0x2ce   :  { %2246 = vst [vmem:[#allocation2 + $0xdb8] sm:$0xff] %v1714_v14 }
 0x2d1   :  { %v1365_v50 = vpop.f32.mrb[220].mxu0 }
 0x2d2   :  { %2247 = vst [vmem:[#allocation2 + $0xdc0] sm:$0xff] %v1365_v50  ;;  %v1718_v48 = vpop.f32.mrb[220].mxu1  ;;  %v1367_v34 = vpop.f32.mrb[221].mxu0 }
 0x2d3   :  { %2249 = vst [vmem:[#allocation2 + $0xdd0] sm:$0xff] %v1718_v48  ;;  %2248 = vst [vmem:[#allocation2 + $0xdc8] sm:$0xff] %v1367_v34  ;;  %v1720_v7 = vpop.f32.mrb[221].mxu1  ;;  %v1369_v8 = vpop.f32.mrb[222].mxu0 }
 0x2d4   :  { %2250 = vst [vmem:[#allocation2 + $0xdd8] sm:$0xff] %v1720_v7  ;;  %2251 = vst [vmem:[#allocation2 + $0xde0] sm:$0xff] %v1369_v8  ;;  %v1722_v12 = vpop.f32.mrb[222].mxu1  ;;  %v1371_v46 = vpop.f32.mrb[223].mxu0 }
 0x2d5   :  { %2253 = vst [vmem:[#allocation2 + $0xdf0] sm:$0xff] %v1722_v12  ;;  %2252 = vst [vmem:[#allocation2 + $0xde8] sm:$0xff] %v1371_v46  ;;  %v1724_v41 = vpop.f32.mrb[223].mxu1 }
 0x2d6   :  { %2254 = vst [vmem:[#allocation2 + $0xdf8] sm:$0xff] %v1724_v41 }
 0x2d9   :  { %v1375_v15 = vpop.f32.mrb[224].mxu0 }
 0x2da   :  { %2255 = vst [vmem:[#allocation2 + $0xe00] sm:$0xff] %v1375_v15  ;;  %v1728_v19 = vpop.f32.mrb[224].mxu1  ;;  %v1377_v18 = vpop.f32.mrb[225].mxu0 }
 0x2db   :  { %2257 = vst [vmem:[#allocation2 + $0xe10] sm:$0xff] %v1728_v19  ;;  %2256 = vst [vmem:[#allocation2 + $0xe08] sm:$0xff] %v1377_v18  ;;  %v1730_v25 = vpop.f32.mrb[225].mxu1  ;;  %v1379_v6 = vpop.f32.mrb[226].mxu0 }
 0x2dc   :  { %2258 = vst [vmem:[#allocation2 + $0xe18] sm:$0xff] %v1730_v25  ;;  %2259 = vst [vmem:[#allocation2 + $0xe20] sm:$0xff] %v1379_v6  ;;  %v1732_v39 = vpop.f32.mrb[226].mxu1  ;;  %v1381_v53 = vpop.f32.mrb[227].mxu0 }
 0x2dd   :  { %2261 = vst [vmem:[#allocation2 + $0xe30] sm:$0xff] %v1732_v39  ;;  %2260 = vst [vmem:[#allocation2 + $0xe28] sm:$0xff] %v1381_v53  ;;  %v1734_v5 = vpop.f32.mrb[227].mxu1 }
 0x2de   :  { %2262 = vst [vmem:[#allocation2 + $0xe38] sm:$0xff] %v1734_v5 }
 0x2e1   :  { %v1385_v4 = vpop.f32.mrb[228].mxu0 }
 0x2e2   :  { %2263 = vst [vmem:[#allocation2 + $0xe40] sm:$0xff] %v1385_v4  ;;  %v1738_v24 = vpop.f32.mrb[228].mxu1  ;;  %v1387_v54 = vpop.f32.mrb[229].mxu0 }
 0x2e3   :  { %2265 = vst [vmem:[#allocation2 + $0xe50] sm:$0xff] %v1738_v24  ;;  %2264 = vst [vmem:[#allocation2 + $0xe48] sm:$0xff] %v1387_v54  ;;  %v1740_v42 = vpop.f32.mrb[229].mxu1  ;;  %v1389_v33 = vpop.f32.mrb[230].mxu0 }
 0x2e4   :  { %2266 = vst [vmem:[#allocation2 + $0xe58] sm:$0xff] %v1740_v42  ;;  %2267 = vst [vmem:[#allocation2 + $0xe60] sm:$0xff] %v1389_v33  ;;  %v1742_v13 = vpop.f32.mrb[230].mxu1  ;;  %v1391_v2 = vpop.f32.mrb[231].mxu0 }
 0x2e5   :  { %2269 = vst [vmem:[#allocation2 + $0xe70] sm:$0xff] %v1742_v13  ;;  %2268 = vst [vmem:[#allocation2 + $0xe68] sm:$0xff] %v1391_v2  ;;  %v1744_v37 = vpop.f32.mrb[231].mxu1 }
 0x2e6   :  { %2270 = vst [vmem:[#allocation2 + $0xe78] sm:$0xff] %v1744_v37 }
 0x2e9   :  { %v1395_v35 = vpop.f32.mrb[232].mxu0 }
 0x2ea   :  { %2271 = vst [vmem:[#allocation2 + $0xe80] sm:$0xff] %v1395_v35  ;;  %v1748_v23 = vpop.f32.mrb[232].mxu1  ;;  %v1397_v32 = vpop.f32.mrb[233].mxu0 }
 0x2eb   :  { %2273 = vst [vmem:[#allocation2 + $0xe90] sm:$0xff] %v1748_v23  ;;  %2272 = vst [vmem:[#allocation2 + $0xe88] sm:$0xff] %v1397_v32  ;;  %v1750_v29 = vpop.f32.mrb[233].mxu1  ;;  %v1399_v43 = vpop.f32.mrb[234].mxu0 }
 0x2ec   :  { %2274 = vst [vmem:[#allocation2 + $0xe98] sm:$0xff] %v1750_v29  ;;  %2275 = vst [vmem:[#allocation2 + $0xea0] sm:$0xff] %v1399_v43  ;;  %v1752_v51 = vpop.f32.mrb[234].mxu1  ;;  %v1401_v10 = vpop.f32.mrb[235].mxu0 }
 0x2ed   :  { %2277 = vst [vmem:[#allocation2 + $0xeb0] sm:$0xff] %v1752_v51  ;;  %2276 = vst [vmem:[#allocation2 + $0xea8] sm:$0xff] %v1401_v10  ;;  %v1754_v11 = vpop.f32.mrb[235].mxu1 }
 0x2ee   :  { %2278 = vst [vmem:[#allocation2 + $0xeb8] sm:$0xff] %v1754_v11 }
 0x2f1   :  { %v1405_v38 = vpop.f32.mrb[236].mxu0 }
 0x2f2   :  { %2279 = vst [vmem:[#allocation2 + $0xec0] sm:$0xff] %v1405_v38  ;;  %v1758_v28 = vpop.f32.mrb[236].mxu1  ;;  %v1407_v63 = vpop.f32.mrb[237].mxu0 }
 0x2f3   :  { %2281 = vst [vmem:[#allocation2 + $0xed0] sm:$0xff] %v1758_v28  ;;  %2280 = vst [vmem:[#allocation2 + $0xec8] sm:$0xff] %v1407_v63  ;;  %v1760_v49 = vpop.f32.mrb[237].mxu1  ;;  %v1409_v16 = vpop.f32.mrb[238].mxu0 }
 0x2f4   :  { %2282 = vst [vmem:[#allocation2 + $0xed8] sm:$0xff] %v1760_v49  ;;  %2283 = vst [vmem:[#allocation2 + $0xee0] sm:$0xff] %v1409_v16  ;;  %v1762_v47 = vpop.f32.mrb[238].mxu1  ;;  %v1411_v55 = vpop.f32.mrb[239].mxu0 }
 0x2f5   :  { %2285 = vst [vmem:[#allocation2 + $0xef0] sm:$0xff] %v1762_v47  ;;  %2284 = vst [vmem:[#allocation2 + $0xee8] sm:$0xff] %v1411_v55  ;;  %v1764_v58 = vpop.f32.mrb[239].mxu1 }
 0x2f6   :  { %2286 = vst [vmem:[#allocation2 + $0xef8] sm:$0xff] %v1764_v58 }
 0x2f9   :  { %v1415_v57 = vpop.f32.mrb[240].mxu0 }
 0x2fa   :  { %2287 = vst [vmem:[#allocation2 + $0xf00] sm:$0xff] %v1415_v57  ;;  %v1768_v1 = vpop.f32.mrb[240].mxu1  ;;  %v1417_v40 = vpop.f32.mrb[241].mxu0 }
 0x2fb   :  { %2289 = vst [vmem:[#allocation2 + $0xf10] sm:$0xff] %v1768_v1  ;;  %2288 = vst [vmem:[#allocation2 + $0xf08] sm:$0xff] %v1417_v40  ;;  %v1770_v9 = vpop.f32.mrb[241].mxu1  ;;  %v1419_v17 = vpop.f32.mrb[242].mxu0 }
 0x2fc   :  { %2290 = vst [vmem:[#allocation2 + $0xf18] sm:$0xff] %v1770_v9  ;;  %2291 = vst [vmem:[#allocation2 + $0xf20] sm:$0xff] %v1419_v17  ;;  %v1772_v56 = vpop.f32.mrb[242].mxu1  ;;  %v1421_v52 = vpop.f32.mrb[243].mxu0 }
 0x2fd   :  { %2293 = vst [vmem:[#allocation2 + $0xf30] sm:$0xff] %v1772_v56  ;;  %2292 = vst [vmem:[#allocation2 + $0xf28] sm:$0xff] %v1421_v52  ;;  %v1774_v44 = vpop.f32.mrb[243].mxu1 }
 0x2fe   :  { %2294 = vst [vmem:[#allocation2 + $0xf38] sm:$0xff] %v1774_v44 }
 0x301   :  { %v1425_v31 = vpop.f32.mrb[244].mxu0 }
 0x302   :  { %2295 = vst [vmem:[#allocation2 + $0xf40] sm:$0xff] %v1425_v31  ;;  %v1778_v45 = vpop.f32.mrb[244].mxu1  ;;  %v1427_v59 = vpop.f32.mrb[245].mxu0 }
 0x303   :  { %2297 = vst [vmem:[#allocation2 + $0xf50] sm:$0xff] %v1778_v45  ;;  %2296 = vst [vmem:[#allocation2 + $0xf48] sm:$0xff] %v1427_v59  ;;  %v1780_v20 = vpop.f32.mrb[245].mxu1  ;;  %v1429_v26 = vpop.f32.mrb[246].mxu0 }
 0x304   :  { %2298 = vst [vmem:[#allocation2 + $0xf58] sm:$0xff] %v1780_v20  ;;  %2299 = vst [vmem:[#allocation2 + $0xf60] sm:$0xff] %v1429_v26  ;;  %v1782_v27 = vpop.f32.mrb[246].mxu1  ;;  %v1431_v30 = vpop.f32.mrb[247].mxu0 }
 0x305   :  { %2301 = vst [vmem:[#allocation2 + $0xf70] sm:$0xff] %v1782_v27  ;;  %2300 = vst [vmem:[#allocation2 + $0xf68] sm:$0xff] %v1431_v30  ;;  %v1784_v0 = vpop.f32.mrb[247].mxu1 }
 0x306   :  { %2302 = vst [vmem:[#allocation2 + $0xf78] sm:$0xff] %v1784_v0 }
 0x309   :  { %v1435_v61 = vpop.f32.mrb[248].mxu0 }
 0x30a   :  { %2303 = vst [vmem:[#allocation2 + $0xf80] sm:$0xff] %v1435_v61  ;;  %v1788_v21 = vpop.f32.mrb[248].mxu1  ;;  %v1437_v22 = vpop.f32.mrb[249].mxu0 }
 0x30b   :  { %2305 = vst [vmem:[#allocation2 + $0xf90] sm:$0xff] %v1788_v21  ;;  %2304 = vst [vmem:[#allocation2 + $0xf88] sm:$0xff] %v1437_v22  ;;  %v1790_v60 = vpop.f32.mrb[249].mxu1  ;;  %v1439_v62 = vpop.f32.mrb[250].mxu0 }
 0x30c   :  { %2306 = vst [vmem:[#allocation2 + $0xf98] sm:$0xff] %v1790_v60  ;;  %2307 = vst [vmem:[#allocation2 + $0xfa0] sm:$0xff] %v1439_v62  ;;  %v1792_v3 = vpop.f32.mrb[250].mxu1  ;;  %v1441_v36 = vpop.f32.mrb[251].mxu0 }
 0x30d   :  { %2309 = vst [vmem:[#allocation2 + $0xfb0] sm:$0xff] %v1792_v3  ;;  %2308 = vst [vmem:[#allocation2 + $0xfa8] sm:$0xff] %v1441_v36  ;;  %v1794_v14 = vpop.f32.mrb[251].mxu1 }
 0x30e   :  { %2310 = vst [vmem:[#allocation2 + $0xfb8] sm:$0xff] %v1794_v14 }
 0x311   :  { %v1445_v50 = vpop.f32.mrb[252].mxu0 }
 0x312   :  { %2311 = vst [vmem:[#allocation2 + $0xfc0] sm:$0xff] %v1445_v50  ;;  %v1798_v48 = vpop.f32.mrb[252].mxu1  ;;  %v1447_v34 = vpop.f32.mrb[253].mxu0 }
 0x313   :  { %2313 = vst [vmem:[#allocation2 + $0xfd0] sm:$0xff] %v1798_v48  ;;  %2312 = vst [vmem:[#allocation2 + $0xfc8] sm:$0xff] %v1447_v34  ;;  %v1800_v7 = vpop.f32.mrb[253].mxu1  ;;  %v1449_v8 = vpop.f32.mrb[254].mxu0 }
 0x314   :  { %2314 = vst [vmem:[#allocation2 + $0xfd8] sm:$0xff] %v1800_v7  ;;  %2315 = vst [vmem:[#allocation2 + $0xfe0] sm:$0xff] %v1449_v8  ;;  %v1802_v12 = vpop.f32.mrb[254].mxu1  ;;  %v1451_v46 = vpop.f32.mrb[255].mxu0 }
 0x315   :  { %2317 = vst [vmem:[#allocation2 + $0xff0] sm:$0xff] %v1802_v12  ;;  %2316 = vst [vmem:[#allocation2 + $0xfe8] sm:$0xff] %v1451_v46  ;;  %v1804_v41 = vpop.f32.mrb[255].mxu1 }
 0x316   :  { %2318 = vst [vmem:[#allocation2 + $0xff8] sm:$0xff] %v1804_v41 }
 0x317   :  { %2829 = shalt.err (!%p2826_p4)
}
 0x318   :  { %s2830_s5 = scalar_lea.hbm %s4020_s1, 65536 }
 0x319   :  { %p2831_p5 = scmp.ne.s32.totalorder %s4020_s1, %s2830_s5  ;;  %p2834_p6 = scmp.lt.u32.totalorder %s2830_s5, %s4020_s1 }
 0x31b   :  { %p2836_p7 = pnand %p2834_p6, %p2831_p5 }
 0x31d   :  { %2839 = shalt.err (!%p2836_p7)
}
 0x31e   :  { %s2843_s10 = smov 512   ;;  %s2844_s11 = smov 32  }
 0x31f   :  { %2330 = dma.vmem_to_hbm [thread:$0]  %s2325_s30, 65536, %s4020_s1, [#allocation3], %s2843_s10, %s2843_s10, %s2844_s11  }
 0x320   :  { %2840 = dma.done.wait [#allocation3], 65536  }
 0x321   :  { %2841 = vsyncadd [#allocation3], 4294901760 }
 0x322   :  { %2334 = vsyncpa [#allocation3], 1 }

</bundles_post_ra>
